<compile_context>
chip_gen: v7x
topology: tpu7x:2x2x1
jax: 0.10.0
libtpu: 0.0.40
codegen_flags: <defaults>
</compile_context>

<pallas_src>
import functools

import jax
import jax.numpy as jnp
import numpy as np
from jax.experimental import pallas as pl
from jax.experimental.pallas import tpu as pltpu

EPS = 1e-5   # nn.LayerNorm default
LANE = 128   # TPU lane width


def _leaky_relu(x, slope=0.2):
    return jnp.where(x >= 0, x, slope * x)


def _layernorm_padded(x, gamma, beta, n_true):
    """LayerNorm over the last axis where lanes >= n_true are exactly zero.

    Uses sum / sum-of-squares so zero-padded lanes do not perturb the
    statistics; divides by the true feature count. Variance is clamped at 0
    for numerical safety (single-pass form can cancel slightly negative).
    """
    inv_n = 1.0 / float(n_true)
    s = jnp.sum(x, axis=-1, keepdims=True)
    s2 = jnp.sum(x * x, axis=-1, keepdims=True)
    mean = s * inv_n
    var = jnp.maximum(s2 * inv_n - mean * mean, 0.0)
    inv = jax.lax.rsqrt(var + EPS)
    # gamma/beta are zero on padded lanes, so padded lanes stay exactly zero.
    return (x - mean) * inv * gamma + beta


def classifier_kernel(x_ref, w1_ref, b1_ref, g1_ref, be1_ref,
                      w2_ref, b2_ref, g2_ref, be2_ref, out_ref,
                      *, h_true, o_true, compute_dtype):
    # ---- Linear 1 (bf16 MXU, f32 accumulate) + LeakyReLU + LayerNorm ----
    x = x_ref[...].astype(compute_dtype)                      # (TB, in_dim)
    h = jnp.dot(x, w1_ref[...],
                preferred_element_type=jnp.float32) + b1_ref[...]
    h = _leaky_relu(h)
    h = _layernorm_padded(h, g1_ref[...], be1_ref[...], h_true)

    # ---- Linear 2 + LeakyReLU + LayerNorm + Sigmoid (f32 epilogue) ----
    o = jnp.dot(h.astype(compute_dtype), w2_ref[...],
                preferred_element_type=jnp.float32) + b2_ref[...]
    o = _leaky_relu(o)
    o = _layernorm_padded(o, g2_ref[...], be2_ref[...], o_true)
    # Unpadded store: only the true output features leave the kernel.
    out_ref[...] = jax.nn.sigmoid(o[:, :o_true]).astype(out_ref.dtype)


def _pad_lane(a, axis, target):
    pad = target - a.shape[axis]
    if pad == 0:
        return a
    widths = [(0, 0)] * a.ndim
    widths[axis] = (0, pad)
    return jnp.pad(a, widths)


def _choose_batch_tile(B, block_b):
    """Batch tile: multiple of 8, capped by block_b, and (when possible) at
    least 2 roughly balanced tiles so both v7x TensorCores get work."""
    if B <= 8:
        return B                               # single full-batch tile
    n_tiles = max(2, pl.cdiv(B, block_b))      # >=2 tiles for megacore
    tb = pl.cdiv(B, n_tiles)
    tb = max(8, ((tb + 7) // 8) * 8)           # round up to sublane multiple
    tb = min(tb, ((B + 7) // 8) * 8)
    return tb


def classifier_forward(x, params, *, block_b=4096, use_bf16=True,
                       out_dtype=jnp.float32):
    (w1, b1, g1, be1, w2, b2, g2, be2) = params
    B, in_dim = x.shape
    h_dim = w1.shape[1]
    out_dim = w2.shape[1]

    # Pad feature dims up to 128 lanes only (zero padding keeps math exact;
    # LayerNorm divides by the true counts inside the kernel). Do NOT pad
    # further to "fill" the MXU — the kernel is HBM-bound, not MXU-bound.
    Hp = ((h_dim + LANE - 1) // LANE) * LANE
    Op = ((out_dim + LANE - 1) // LANE) * LANE

    compute_dtype = jnp.bfloat16 if use_bf16 else jnp.float32

    w1p = _pad_lane(w1, 1, Hp).astype(compute_dtype)
    b1p = _pad_lane(b1, 1, Hp)
    g1p = _pad_lane(g1, 1, Hp)
    be1p = _pad_lane(be1, 1, Hp)
    w2p = _pad_lane(_pad_lane(w2, 0, Hp), 1, Op).astype(compute_dtype)
    b2p = _pad_lane(b2, 1, Op)
    g2p = _pad_lane(g2, 1, Op)
    be2p = _pad_lane(be2, 1, Op)

    TB = _choose_batch_tile(B, block_b)
    grid = (pl.cdiv(B, TB),)

    kernel = functools.partial(
        classifier_kernel,
        h_true=h_dim, o_true=out_dim,
        compute_dtype=compute_dtype)

    const2d = lambda i: (0, 0)   # weights / LN params stay resident in VMEM
    # (Constant-index operands are not re-DMA'd per step; single-buffering
    #  them via pipeline_mode is a minor VMEM saving, skipped for portability.)

    out = pl.pallas_call(
        kernel,
        out_shape=jax.ShapeDtypeStruct((B, out_dim), out_dtype),
        grid=grid,
        in_specs=[
            pl.BlockSpec((TB, in_dim), lambda i: (i, 0)),   # x: batch-tiled
            pl.BlockSpec(w1p.shape, const2d),
            pl.BlockSpec(b1p.shape, const2d),
            pl.BlockSpec(g1p.shape, const2d),
            pl.BlockSpec(be1p.shape, const2d),
            pl.BlockSpec(w2p.shape, const2d),
            pl.BlockSpec(b2p.shape, const2d),
            pl.BlockSpec(g2p.shape, const2d),
            pl.BlockSpec(be2p.shape, const2d),
        ],
        out_specs=pl.BlockSpec((TB, out_dim), lambda i: (i, 0)),  # unpadded
        compiler_params=pltpu.CompilerParams(
            dimension_semantics=("parallel",)),   # megacore sharding on v7x
    )(x, w1p, b1p, g1p, be1p, w2p, b2p, g2p, be2p)

    return out


def init_params(key, in_dim, h_dim, out_dim):
    """Deterministic init matching the module: xavier_normal_ weights, zero
    bias, LayerNorm gamma=1 / beta=0."""
    k1, k2 = jax.random.split(key)

    def xavier_normal(k, fan_in, fan_out):
        std = float(np.sqrt(2.0 / (fan_in + fan_out)))
        # PyTorch weight is (out, in); we store the transpose (in, out).
        return (jax.random.normal(k, (fan_out, fan_in), jnp.float32) * std).T

    w1 = xavier_normal(k1, in_dim, h_dim)
    b1 = jnp.zeros((1, h_dim), jnp.float32)
    g1 = jnp.ones((1, h_dim), jnp.float32)
    be1 = jnp.zeros((1, h_dim), jnp.float32)

    w2 = xavier_normal(k2, h_dim, out_dim)
    b2 = jnp.zeros((1, out_dim), jnp.float32)
    g2 = jnp.ones((1, out_dim), jnp.float32)
    be2 = jnp.zeros((1, out_dim), jnp.float32)
    return (w1, b1, g1, be1, w2, b2, g2, be2)


def _layernorm_ref(x, gamma, beta):
    mean = jnp.mean(x, axis=-1, keepdims=True)
    var = jnp.mean(jnp.square(x - mean), axis=-1, keepdims=True)
    inv = jax.lax.rsqrt(var + EPS)
    return (x - mean) * inv * gamma + beta


def reference_forward(x, params, use_bf16=True):
    """Pure-JAX reference with the same matmul precision policy as the kernel."""
    (w1, b1, g1, be1, w2, b2, g2, be2) = params
    cd = jnp.bfloat16 if use_bf16 else jnp.float32
    h = jnp.dot(x.astype(cd), w1.astype(cd),
                preferred_element_type=jnp.float32) + b1
    h = _leaky_relu(h)
    h = _layernorm_ref(h, g1, be1)
    o = jnp.dot(h.astype(cd), w2.astype(cd),
                preferred_element_type=jnp.float32) + b2
    o = _leaky_relu(o)
    o = _layernorm_ref(o, g2, be2)
    return jax.nn.sigmoid(o)


if __name__ == "__main__":
    key = jax.random.PRNGKey(0)
    kx, kp = jax.random.split(key)

    # Small-but-tiled shapes: tile chooser yields 2 batch tiles of 128 rows.
    batch, in_dim, h_dim, out_dim = 256, 32, 64, 16
    x = jax.random.normal(kx, (batch, in_dim), jnp.float32)
    params = init_params(kp, in_dim, h_dim, out_dim)

    out = classifier_forward(x, params, use_bf16=True)
    out = jax.block_until_ready(out)
    assert out.shape == (batch, out_dim)

    ref = reference_forward(x, params, use_bf16=True)
    np.testing.assert_allclose(np.asarray(out), np.asarray(ref),
                               rtol=2e-3, atol=2e-3)

    print("KERNEL_OK")
</pallas_src>

<mosaic_0001>
module attributes {stable_mosaic.version = 11 : i64} {
  func.func @classifier_kernel(%arg0: i32, %arg1: memref<128x32xf32, #tpu.memory_space<vmem>>, %arg2: memref<32x128xbf16, #tpu.memory_space<vmem>>, %arg3: memref<1x128xf32, #tpu.memory_space<vmem>>, %arg4: memref<1x128xf32, #tpu.memory_space<vmem>>, %arg5: memref<1x128xf32, #tpu.memory_space<vmem>>, %arg6: memref<128x128xbf16, #tpu.memory_space<vmem>>, %arg7: memref<1x128xf32, #tpu.memory_space<vmem>>, %arg8: memref<1x128xf32, #tpu.memory_space<vmem>>, %arg9: memref<1x128xf32, #tpu.memory_space<vmem>>, %arg10: memref<128x16xf32, #tpu.memory_space<vmem>>) attributes {dimension_semantics = [#tpu.dimension_semantics<parallel>], iteration_bounds = array<i64: 2>, scalar_prefetch = 0 : i64, scratch_operands = 0 : i64, tpu.core_type = #tpu.core_type<tc>, window_params = [{transform_indices = @transform_0, window_bounds = array<i64: 128, 32>}, {pipeline_mode = #tpu.pipeline_mode<synchronous>, transform_indices = @transform_1, window_bounds = array<i64: 32, 128>}, {pipeline_mode = #tpu.pipeline_mode<synchronous>, transform_indices = @transform_2, window_bounds = array<i64: 1, 128>}, {pipeline_mode = #tpu.pipeline_mode<synchronous>, transform_indices = @transform_3, window_bounds = array<i64: 1, 128>}, {pipeline_mode = #tpu.pipeline_mode<synchronous>, transform_indices = @transform_4, window_bounds = array<i64: 1, 128>}, {pipeline_mode = #tpu.pipeline_mode<synchronous>, transform_indices = @transform_5, window_bounds = array<i64: 128, 128>}, {pipeline_mode = #tpu.pipeline_mode<synchronous>, transform_indices = @transform_6, window_bounds = array<i64: 1, 128>}, {pipeline_mode = #tpu.pipeline_mode<synchronous>, transform_indices = @transform_7, window_bounds = array<i64: 1, 128>}, {pipeline_mode = #tpu.pipeline_mode<synchronous>, transform_indices = @transform_8, window_bounds = array<i64: 1, 128>}, {transform_indices = @transform_9, window_bounds = array<i64: 128, 16>}]} {
    %c0 = arith.constant 0 : index
    %c0_0 = arith.constant 0 : index
    %0 = vector.load %arg1[%c0, %c0_0] : memref<128x32xf32, #tpu.memory_space<vmem>>, vector<128x32xf32>
    %1 = arith.truncf %0 : vector<128x32xf32> to vector<128x32xbf16>
    %c0_1 = arith.constant 0 : index
    %c0_2 = arith.constant 0 : index
    %2 = vector.load %arg2[%c0_1, %c0_2] : memref<32x128xbf16, #tpu.memory_space<vmem>>, vector<32x128xbf16>
    %cst = arith.constant dense<0.000000e+00> : vector<128x128xf32>
    %3 = tpu.matmul %1, %2, %cst {dimension_numbers = #tpu.dot_dimension_numbers<[1], [0], [0], [1], [0, 0, 1, 1], [], []>} : vector<128x32xbf16>, vector<32x128xbf16>, vector<128x128xf32> -> vector<128x128xf32>
    %c0_3 = arith.constant 0 : index
    %c0_4 = arith.constant 0 : index
    %4 = vector.load %arg3[%c0_3, %c0_4] : memref<1x128xf32, #tpu.memory_space<vmem>>, vector<1x128xf32>
    %5 = vector.broadcast %4 : vector<1x128xf32> to vector<128x128xf32>
    %6 = arith.addf %3, %5 : vector<128x128xf32>
    %cst_5 = arith.constant 0.000000e+00 : f32
    %7 = vector.broadcast %cst_5 : f32 to vector<128x128xf32>
    %8 = arith.cmpf oge, %6, %7 : vector<128x128xf32>
    %cst_6 = arith.constant 2.000000e-01 : f32
    %9 = vector.broadcast %cst_6 : f32 to vector<128x128xf32>
    %10 = arith.mulf %9, %6 : vector<128x128xf32>
    %11 = arith.select %8, %6, %10 : vector<128x128xi1>, vector<128x128xf32>
    %c0_7 = arith.constant 0 : index
    %c0_8 = arith.constant 0 : index
    %12 = vector.load %arg4[%c0_7, %c0_8] : memref<1x128xf32, #tpu.memory_space<vmem>>, vector<1x128xf32>
    %c0_9 = arith.constant 0 : index
    %c0_10 = arith.constant 0 : index
    %13 = vector.load %arg5[%c0_9, %c0_10] : memref<1x128xf32, #tpu.memory_space<vmem>>, vector<1x128xf32>
    %cst_11 = arith.constant dense<0.000000e+00> : vector<128xf32>
    %14 = vector.multi_reduction <add>, %11, %cst_11 [1] : vector<128x128xf32> to vector<128xf32>
    %15 = vector.shape_cast %14 : vector<128xf32> to vector<128x1xf32>
    %16 = arith.mulf %11, %11 : vector<128x128xf32>
    %cst_12 = arith.constant dense<0.000000e+00> : vector<128xf32>
    %17 = vector.multi_reduction <add>, %16, %cst_12 [1] : vector<128x128xf32> to vector<128xf32>
    %18 = vector.shape_cast %17 : vector<128xf32> to vector<128x1xf32>
    %cst_13 = arith.constant 1.562500e-02 : f32
    %19 = vector.broadcast %cst_13 : f32 to vector<128x1xf32>
    %20 = arith.mulf %15, %19 : vector<128x1xf32>
    %cst_14 = arith.constant 1.562500e-02 : f32
    %21 = vector.broadcast %cst_14 : f32 to vector<128x1xf32>
    %22 = arith.mulf %18, %21 : vector<128x1xf32>
    %23 = arith.mulf %20, %20 : vector<128x1xf32>
    %24 = arith.subf %22, %23 : vector<128x1xf32>
    %cst_15 = arith.constant 0.000000e+00 : f32
    %25 = vector.broadcast %cst_15 : f32 to vector<128x1xf32>
    %26 = arith.maximumf %24, %25 : vector<128x1xf32>
    %cst_16 = arith.constant 9.99999974E-6 : f32
    %27 = vector.broadcast %cst_16 : f32 to vector<128x1xf32>
    %28 = arith.addf %26, %27 : vector<128x1xf32>
    %29 = math.rsqrt %28 : vector<128x1xf32>
    %30 = vector.broadcast %20 : vector<128x1xf32> to vector<128x128xf32>
    %31 = arith.subf %11, %30 : vector<128x128xf32>
    %32 = vector.broadcast %29 : vector<128x1xf32> to vector<128x128xf32>
    %33 = arith.mulf %31, %32 : vector<128x128xf32>
    %34 = vector.broadcast %12 : vector<1x128xf32> to vector<128x128xf32>
    %35 = arith.mulf %33, %34 : vector<128x128xf32>
    %36 = vector.broadcast %13 : vector<1x128xf32> to vector<128x128xf32>
    %37 = arith.addf %35, %36 : vector<128x128xf32>
    %38 = arith.truncf %37 : vector<128x128xf32> to vector<128x128xbf16>
    %c0_17 = arith.constant 0 : index
    %c0_18 = arith.constant 0 : index
    %39 = vector.load %arg6[%c0_17, %c0_18] : memref<128x128xbf16, #tpu.memory_space<vmem>>, vector<128x128xbf16>
    %cst_19 = arith.constant dense<0.000000e+00> : vector<128x128xf32>
    %40 = tpu.matmul %38, %39, %cst_19 {dimension_numbers = #tpu.dot_dimension_numbers<[1], [0], [0], [1], [0, 0, 1, 1], [], []>} : vector<128x128xbf16>, vector<128x128xbf16>, vector<128x128xf32> -> vector<128x128xf32>
    %c0_20 = arith.constant 0 : index
    %c0_21 = arith.constant 0 : index
    %41 = vector.load %arg7[%c0_20, %c0_21] : memref<1x128xf32, #tpu.memory_space<vmem>>, vector<1x128xf32>
    %42 = vector.broadcast %41 : vector<1x128xf32> to vector<128x128xf32>
    %43 = arith.addf %40, %42 : vector<128x128xf32>
    %cst_22 = arith.constant 0.000000e+00 : f32
    %44 = vector.broadcast %cst_22 : f32 to vector<128x128xf32>
    %45 = arith.cmpf oge, %43, %44 : vector<128x128xf32>
    %cst_23 = arith.constant 2.000000e-01 : f32
    %46 = vector.broadcast %cst_23 : f32 to vector<128x128xf32>
    %47 = arith.mulf %46, %43 : vector<128x128xf32>
    %48 = arith.select %45, %43, %47 : vector<128x128xi1>, vector<128x128xf32>
    %c0_24 = arith.constant 0 : index
    %c0_25 = arith.constant 0 : index
    %49 = vector.load %arg8[%c0_24, %c0_25] : memref<1x128xf32, #tpu.memory_space<vmem>>, vector<1x128xf32>
    %c0_26 = arith.constant 0 : index
    %c0_27 = arith.constant 0 : index
    %50 = vector.load %arg9[%c0_26, %c0_27] : memref<1x128xf32, #tpu.memory_space<vmem>>, vector<1x128xf32>
    %cst_28 = arith.constant dense<0.000000e+00> : vector<128xf32>
    %51 = vector.multi_reduction <add>, %48, %cst_28 [1] : vector<128x128xf32> to vector<128xf32>
    %52 = vector.shape_cast %51 : vector<128xf32> to vector<128x1xf32>
    %53 = arith.mulf %48, %48 : vector<128x128xf32>
    %cst_29 = arith.constant dense<0.000000e+00> : vector<128xf32>
    %54 = vector.multi_reduction <add>, %53, %cst_29 [1] : vector<128x128xf32> to vector<128xf32>
    %55 = vector.shape_cast %54 : vector<128xf32> to vector<128x1xf32>
    %cst_30 = arith.constant 6.250000e-02 : f32
    %56 = vector.broadcast %cst_30 : f32 to vector<128x1xf32>
    %57 = arith.mulf %52, %56 : vector<128x1xf32>
    %cst_31 = arith.constant 6.250000e-02 : f32
    %58 = vector.broadcast %cst_31 : f32 to vector<128x1xf32>
    %59 = arith.mulf %55, %58 : vector<128x1xf32>
    %60 = arith.mulf %57, %57 : vector<128x1xf32>
    %61 = arith.subf %59, %60 : vector<128x1xf32>
    %cst_32 = arith.constant 0.000000e+00 : f32
    %62 = vector.broadcast %cst_32 : f32 to vector<128x1xf32>
    %63 = arith.maximumf %61, %62 : vector<128x1xf32>
    %cst_33 = arith.constant 9.99999974E-6 : f32
    %64 = vector.broadcast %cst_33 : f32 to vector<128x1xf32>
    %65 = arith.addf %63, %64 : vector<128x1xf32>
    %66 = math.rsqrt %65 : vector<128x1xf32>
    %67 = vector.broadcast %57 : vector<128x1xf32> to vector<128x128xf32>
    %68 = arith.subf %48, %67 : vector<128x128xf32>
    %69 = vector.broadcast %66 : vector<128x1xf32> to vector<128x128xf32>
    %70 = arith.mulf %68, %69 : vector<128x128xf32>
    %71 = vector.broadcast %49 : vector<1x128xf32> to vector<128x128xf32>
    %72 = arith.mulf %70, %71 : vector<128x128xf32>
    %73 = vector.broadcast %50 : vector<1x128xf32> to vector<128x128xf32>
    %74 = arith.addf %72, %73 : vector<128x128xf32>
    %75 = vector.extract_strided_slice %74 {offsets = [0, 0], sizes = [128, 16], strides = [1, 1]} : vector<128x128xf32> to vector<128x16xf32>
    %76 = arith.negf %75 : vector<128x16xf32>
    %77 = math.exp %76 : vector<128x16xf32>
    %cst_34 = arith.constant 1.000000e+00 : f32
    %78 = vector.broadcast %cst_34 : f32 to vector<128x16xf32>
    %79 = arith.addf %78, %77 : vector<128x16xf32>
    %80 = arith.divf %78, %79 : vector<128x16xf32>
    %c0_35 = arith.constant 0 : index
    %c0_36 = arith.constant 0 : index
    %81 = vector.load %arg10[%c0_35, %c0_36] : memref<128x16xf32, #tpu.memory_space<vmem>>, vector<128x16xf32>
    tpu.vector_store %arg10[%c0_35, %c0_36], %80 {strides = array<i32>} : memref<128x16xf32, #tpu.memory_space<vmem>>, vector<128x16xf32>,
    return
  }
  func.func @transform_0(%arg0: i32) -> (i32, i32) {
    %c0_i32 = arith.constant 0 : i32
    %c0_i32_0 = arith.constant 0 : i32
    return %arg0, %c0_i32 : i32, i32
  }
  func.func @transform_1(%arg0: i32) -> (i32, i32) {
    %c0_i32 = arith.constant 0 : i32
    %c0_i32_0 = arith.constant 0 : i32
    %c0_i32_1 = arith.constant 0 : i32
    return %c0_i32, %c0_i32_0 : i32, i32
  }
  func.func @transform_2(%arg0: i32) -> (i32, i32) {
    %c0_i32 = arith.constant 0 : i32
    %c0_i32_0 = arith.constant 0 : i32
    %c0_i32_1 = arith.constant 0 : i32
    return %c0_i32, %c0_i32_0 : i32, i32
  }
  func.func @transform_3(%arg0: i32) -> (i32, i32) {
    %c0_i32 = arith.constant 0 : i32
    %c0_i32_0 = arith.constant 0 : i32
    %c0_i32_1 = arith.constant 0 : i32
    return %c0_i32, %c0_i32_0 : i32, i32
  }
  func.func @transform_4(%arg0: i32) -> (i32, i32) {
    %c0_i32 = arith.constant 0 : i32
    %c0_i32_0 = arith.constant 0 : i32
    %c0_i32_1 = arith.constant 0 : i32
    return %c0_i32, %c0_i32_0 : i32, i32
  }
  func.func @transform_5(%arg0: i32) -> (i32, i32) {
    %c0_i32 = arith.constant 0 : i32
    %c0_i32_0 = arith.constant 0 : i32
    %c0_i32_1 = arith.constant 0 : i32
    return %c0_i32, %c0_i32_0 : i32, i32
  }
  func.func @transform_6(%arg0: i32) -> (i32, i32) {
    %c0_i32 = arith.constant 0 : i32
    %c0_i32_0 = arith.constant 0 : i32
    %c0_i32_1 = arith.constant 0 : i32
    return %c0_i32, %c0_i32_0 : i32, i32
  }
  func.func @transform_7(%arg0: i32) -> (i32, i32) {
    %c0_i32 = arith.constant 0 : i32
    %c0_i32_0 = arith.constant 0 : i32
    %c0_i32_1 = arith.constant 0 : i32
    return %c0_i32, %c0_i32_0 : i32, i32
  }
  func.func @transform_8(%arg0: i32) -> (i32, i32) {
    %c0_i32 = arith.constant 0 : i32
    %c0_i32_0 = arith.constant 0 : i32
    %c0_i32_1 = arith.constant 0 : i32
    return %c0_i32, %c0_i32_0 : i32, i32
  }
  func.func @transform_9(%arg0: i32) -> (i32, i32) {
    %c0_i32 = arith.constant 0 : i32
    %c0_i32_0 = arith.constant 0 : i32
    return %arg0, %c0_i32 : i32, i32
  }
}

</mosaic_0001>

<bundles_post_ra>
// kernel: tpu_custom_call.1
= control target key start
LH: loop header
LB: loop body
LE: loop exit
PB: predicated region body
PF: predicated region fallthrough
CT: control target
= control target key end

     0   :  { %s1836_s30 = smov 0   ;;  %s2419_s0 = inlined_call_operand.vmem [shape: f32[256,32], index: 0, kind: input, shape index: {}]   ;;  %s2420_s1 = inlined_call_operand.vmem [shape: bf16[32,128], index: 1, kind: input, shape index: {}]   ;;  %s2421_s2 = inlined_call_operand.vmem [shape: f32[1,128], index: 2, kind: input, shape index: {}]   ;;  %s2422_s3 = inlined_call_operand.vmem [shape: f32[1,128], index: 3, kind: input, shape index: {}]   ;;  %s2423_s4 = inlined_call_operand.vmem [shape: f32[1,128], index: 4, kind: input, shape index: {}]   ;;  %s2424_s5 = inlined_call_operand.vmem [shape: bf16[128,128], index: 5, kind: input, shape index: {}]   ;;  %s2425_s6 = inlined_call_operand.vmem [shape: f32[1,128], index: 6, kind: input, shape index: {}]   ;;  %s2426_s7 = inlined_call_operand.vmem [shape: f32[1,128], index: 7, kind: input, shape index: {}]   ;;  %s2427_s8 = inlined_call_operand.vmem [shape: f32[1,128], index: 8, kind: input, shape index: {}]   ;;  %s2428_s9 = inlined_call_operand.vmem [shape: f32[256,16], index: 9, kind: output, shape index: {}]  }
   0x1 LB: > { %s1487_s10 = sadd.s32 4294967295, %s1784_s30   ;;  %p1491_p0 = scmp.ge.s32.totalorder %s1784_s30, 1  ;;  %s1784_s30 = sphi %s1836_s30, %s19_s30  }
   0x2   : > { %p288_p1 = scmp.lt.s32.totalorder %s1784_s30, 3 }
   0x4   : > { %p289_p2 = pnand %p1491_p0, %p288_p1 }
   0x5   : > { %v1640_v0 = vld [vmem:[%s2420_s1] sm:$0xff] (!%p289_p2)   ;;  %s1492_s13 = sshll.u32 (!%p289_p2), %s1487_s10, 4  ;;  %v1641_v1 = vld [vmem:[%s2420_s1 + $0x8] sm:$0xff] (!%p289_p2)   ;;  %vm384_vm0 = vcmask (!%p289_p2), 261120  }
   0x6   : > { %292 = sbr.rel (%p289_p2) target bundleno = 899 (0x383), region = 56  ;;  %p325_p3 = scmp.lt.s32.totalorder (!%p289_p2), %s1492_s13, 31  ;;  %1564 = vmatprep.subr.bf16.mxu0 (!%p289_p2), %v1640_v0  ;;  %v1887_v26 = vld [vmem:[%s2421_s2] ss:$0 sm:$0xff] (!%p289_p2) }
   0x7   : > { %1565 = vmatpush3.bf16.msra.mxu0 (!%p289_p2), %v1640_v0 }
   0x8   : > { %1566 = vmatprep.subr.bf16.mxu0 (!%p289_p2), %v1641_v1 }
   0xb   : > { %1567 = vmatpush3.bf16.msra.mxu0 (!%p289_p2), %v1641_v1 }
   0xd   : > { %s2430_s13 = smov (!%p325_p3, %s1492_s13), 31 }
   0xe   : > { %s1493_s16 = sshll.u32 %s2430_s13, 3 }
   0xf   : > { %s1858_s19 = scalar_lea.vmem %s2419_s0, %s1493_s16  ;;  %s2336_s12 = scalar_lea.vmem %s2428_s9, %s1493_s16 }
  0x10   : > { %v337_v2 = vld [vmem:[%s1858_s19] sm:$0xff]  ;;  %v338_v3 = vld [vmem:[%s1858_s19 + $0x8] sm:$0xff]  ;;  %v339_v4 = vld [vmem:[%s1858_s19 + $0x10] sm:$0xff] }
  0x11   : > { %v353_v5 = vpack.c.bf16 %v338_v3, %v337_v2  ;;  %v340_v6 = vld [vmem:[%s1858_s19 + $0x18] sm:$0xff]  ;;  %v341_v7 = vld [vmem:[%s1858_s19 + $0x20] sm:$0xff]  ;;  %v342_v8 = vld [vmem:[%s1858_s19 + $0x28] sm:$0xff] }
  0x12   : > { %v354_v9 = vpack.c.bf16 %v340_v6, %v339_v4  ;;  %v355_v10 = vpack.c.bf16 %v342_v8, %v341_v7  ;;  %v343_v11 = vld [vmem:[%s1858_s19 + $0x30] sm:$0xff]  ;;  %v344_v12 = vld [vmem:[%s1858_s19 + $0x38] sm:$0xff]  ;;  %v345_v13 = vld [vmem:[%s1858_s19 + $0x40] sm:$0xff] }
  0x13   : > { %1568 = vmatprep.mubr.msk.bf16.mxu0 %vm384_vm0, %v353_v5  ;;  %v346_v14 = vld [vmem:[%s1858_s19 + $0x48] sm:$0xff]  ;;  %v356_v15 = vpack.c.bf16 %v344_v12, %v343_v11  ;;  %v347_v17 = vld [vmem:[%s1858_s19 + $0x50] sm:$0xff]  ;;  %v348_v18 = vld [vmem:[%s1858_s19 + $0x58] sm:$0xff] }
  0x14   : > { %1569 = vmatmul.mubr.msk.bf16.vlgmr.msra.gmra.mrb[0].mxu0 %vm384_vm0, %v354_v9  ;;  %v357_v16 = vpack.c.bf16 %v346_v14, %v345_v13  ;;  %v349_v19 = vld [vmem:[%s1858_s19 + $0x60] sm:$0xff]  ;;  %v350_v20 = vld [vmem:[%s1858_s19 + $0x68] sm:$0xff]  ;;  %v358_v21 = vpack.c.bf16 %v348_v18, %v347_v17  ;;  %v351_v23 = vld [vmem:[%s1858_s19 + $0x70] sm:$0xff] }
  0x15   : > { %1572 = vmatprep.mubr.msk.bf16.mxu0 %vm384_vm0, %v355_v10  ;;  %v359_v22 = vpack.c.bf16 %v350_v20, %v349_v19  ;;  %v352_v24 = vld [vmem:[%s1858_s19 + $0x78] sm:$0xff]  ;;  %v1642_v7 = vld [vmem:[%s2424_s5] sm:$0xff]   ;;  %v1643_v13 = vld [vmem:[%s2424_s5 + $0x8] sm:$0xff]  }
  0x16   : > { %v360_v25 = vpack.c.bf16 %v352_v24, %v351_v23  ;;  %1584 = vmatprep.subr.bf16.mxu0 %v1642_v7  ;;  %1616 = vmatprep.subr.bf16.mxu1 %v1642_v7 }
  0x17   : > { %1585 = vmatpush3.bf16.msra.mxu0 %v1642_v7  ;;  %1624 = vmatpush3.bf16.msra.mxu1 %v1642_v7 }
  0x18   : > { %1586 = vmatprep.subr.bf16.mxu0 %v1643_v13  ;;  %1617 = vmatprep.subr.bf16.mxu1 %v1643_v13 }
  0x1b   : > { %1587 = vmatpush3.bf16.msra.mxu0 %v1643_v13  ;;  %1625 = vmatpush3.bf16.msra.mxu1 %v1643_v13 }
  0x1c   : > { %1573 = vmatmul.mubr.msk.bf16.gmra.mrb[4].mxu0 %vm384_vm0, %v356_v15 }
  0x1d   : > { %1576 = vmatprep.mubr.msk.bf16.mxu0 %vm384_vm0, %v357_v16 }
  0x24   : > { %1577 = vmatmul.mubr.msk.bf16.gmra.mrb[8].mxu0 %vm384_vm0, %v358_v21  ;;  %v1644_v21 = vld [vmem:[%s2424_s5 + $0x10] sm:$0xff]  }
  0x25   : > { %1580 = vmatprep.mubr.msk.bf16.mxu0 %vm384_vm0, %v359_v22  ;;  %1588 = vmatprep.subr.bf16.mxu0 %v1644_v21 }
  0x26   : > { %1618 = vmatprep.subr.bf16.mxu1 %v1644_v21  ;;  %1589 = vmatpush3.bf16.msra.mxu0 %v1644_v21 }
  0x27   : > { %1626 = vmatpush3.bf16.msra.mxu1 %v1644_v21 }
  0x2c   : > { %1581 = vmatmul.mubr.msk.bf16.gmra.mrb[12].mxu0 %vm384_vm0, %v360_v25  ;;  %v1645_v25 = vld [vmem:[%s2424_s5 + $0x18] sm:$0xff]  }
  0x2d   : > { %1590 = vmatprep.subr.bf16.mxu0 %v1645_v25  ;;  %1619 = vmatprep.subr.bf16.mxu1 %v1645_v25 }
  0x2e   : > { %1591 = vmatpush3.bf16.msra.mxu0 %v1645_v25  ;;  %1627 = vmatpush3.bf16.msra.mxu1 %v1645_v25 }
  0xe7   : > { %v1570_v27 = vpop.f32.mrb[0].mxu0 }
  0xe8   : > { %v452_v28 = vadd.f32 %v1570_v27, %v1887_v26  ;;  %v443_v29 = vpop.f32.mrb[1].mxu0 }
  0xe9   : > { %v444_v30 = vadd.f32 %v1887_v26, %v443_v29  ;;  %v1571_v31 = vpop.f32.mrb[2].mxu0 }
  0xea   : > { %v524_v32 = vmul.f32 0.2, %v452_v28  ;;  %v455_v33 = vadd.f32 %v1571_v31, %v1887_v26  ;;  %v446_v34 = vpop.f32.mrb[3].mxu0  ;;  %vm508_vm1 = vcmp.ge.f32.partialorder %v452_v28, 0.0 }
  0xeb   : > { %v447_v35 = vadd.f32 %v1887_v26, %v446_v34  ;;  %v522_v36 = vmul.f32 0.2, %v444_v30  ;;  %vm506_vm3 = vcmp.ge.f32.partialorder %v444_v30, 0.0 }
  0xec   : > { %v525_v37 = vmul.f32 0.2, %v455_v33  ;;  %v1893_v38 = vsel %vm508_vm1, %v452_v28, %v524_v32  ;;  %vm509_vm2 = vcmp.ge.f32.partialorder %v455_v33, 0.0 }
  0xed   : > { %560 = vadd.xlane.f32.xlu0 %v1893_v38  ;;  %v523_v39 = vmul.f32 0.2, %v447_v35  ;;  %vm507_vm4 = vcmp.ge.f32.partialorder %v447_v35, 0.0  ;;  %v1899_v42 = vsel %vm506_vm3, %v444_v30, %v522_v36  ;;  %v590_v48 = vmul.f32 %v1893_v38, %v1893_v38  ;;  %v1646_v30 = vld [vmem:[%s2424_s5 + $0x20] sm:$0xff]   ;;  %v1647_v36 = vld [vmem:[%s2424_s5 + $0x28] sm:$0xff]  }
  0xee   : > { %v1896_v40 = vsel %vm509_vm2, %v455_v33, %v525_v37  ;;  %v588_v52 = vmul.f32 %v1899_v42, %v1899_v42  ;;  %1592 = vmatprep.subr.bf16.mxu0 %v1646_v30  ;;  %1620 = vmatprep.subr.bf16.mxu1 %v1646_v30 }
  0xef   : > { %562 = vadd.xlane.f32.xlu1 %v1896_v40  ;;  %v1574_v41 = vpop.f32.mrb[4].mxu0  ;;  %v1902_v45 = vsel %vm507_vm4, %v447_v35, %v523_v39  ;;  %v591_v50 = vmul.f32 %v1896_v40, %v1896_v40  ;;  %1593 = vmatpush3.bf16.msra.mxu0 %v1646_v30 }
  0xf0   : > { %v459_v43 = vpop.f32.mrb[5].mxu0  ;;  %v468_v49 = vadd.f32 %v1574_v41, %v1887_v26  ;;  %v589_v56 = vmul.f32 %v1902_v45, %v1902_v45  ;;  %1628 = vmatpush3.bf16.msra.mxu1 %v1646_v30  ;;  %1594 = vmatprep.subr.bf16.mxu0 %v1647_v36 }
  0xf1   : > { %556 = vadd.xlane.f32.xlu0 %v1899_v42  ;;  %v1575_v44 = vpop.f32.mrb[6].mxu0  ;;  %v460_v46 = vadd.f32 %v1887_v26, %v459_v43  ;;  %1621 = vmatprep.subr.bf16.mxu1 %v1647_v36 }
  0xf2   : > { %v462_v47 = vpop.f32.mrb[7].mxu0  ;;  %v528_v54 = vmul.f32 0.2, %v468_v49  ;;  %vm512_vm6 = vcmp.ge.f32.partialorder %v468_v49, 0.0  ;;  %v471_v58 = vadd.f32 %v1575_v44, %v1887_v26 }
  0xf3   : > { %558 = vadd.xlane.f32.xlu1 %v1902_v45  ;;  %v526_v51 = vmul.f32 0.2, %v460_v46  ;;  %vm510_vm5 = vcmp.ge.f32.partialorder %v460_v46, 0.0  ;;  %v463_v61 = vadd.f32 %v1887_v26, %v462_v47  ;;  %1595 = vmatpush3.bf16.msra.mxu0 %v1647_v36 }
  0xf4   : > { %v1919_v62 = vsel %vm512_vm6, %v468_v49, %v528_v54  ;;  %v529_v63 = vmul.f32 0.2, %v471_v58  ;;  %vm513_vm7 = vcmp.ge.f32.partialorder %v471_v58, 0.0  ;;  %1629 = vmatpush3.bf16.msra.mxu1 %v1647_v36  ;;  %v1649_v49 = vld [vmem:[%s2424_s5 + $0x38] sm:$0xff]  }
  0xf5   : > { %608 = vadd.xlane.f32.xlu0 %v590_v48  ;;  %v1916_v59 = vsel %vm510_vm5, %v460_v46, %v526_v51  ;;  %v594_v0 = vmul.f32 %v1919_v62, %v1919_v62  ;;  %v527_v2 = vmul.f32 0.2, %v463_v61  ;;  %vm511_vm8 = vcmp.ge.f32.partialorder %v463_v61, 0.0  ;;  %v1648_v46 = vld [vmem:[%s2424_s5 + $0x30] sm:$0xff]  }
  0xf6   : > { %v1927_v5 = vsel %vm513_vm7, %v471_v58, %v529_v63  ;;  %v592_v12 = vmul.f32 %v1916_v59, %v1916_v59  ;;  %1596 = vmatprep.subr.bf16.mxu0 %v1648_v46  ;;  %1622 = vmatprep.subr.bf16.mxu1 %v1648_v46 }
  0xf7   : > { %610 = vadd.xlane.f32.xlu1 %v591_v50  ;;  %v1578_v53 = vpop.f32.mrb[8].mxu0  ;;  %v1936_v9 = vsel %vm511_vm8, %v463_v61, %v527_v2  ;;  %v595_v10 = vmul.f32 %v1927_v5, %v1927_v5  ;;  %1597 = vmatpush3.bf16.msra.mxu0 %v1648_v46 }
  0xf8   : > { %v475_v55 = vpop.f32.mrb[9].mxu0  ;;  %v484_v8 = vadd.f32 %v1578_v53, %v1887_v26  ;;  %v593_v16 = vmul.f32 %v1936_v9, %v1936_v9  ;;  %1630 = vmatpush3.bf16.msra.mxu1 %v1648_v46  ;;  %1598 = vmatprep.subr.bf16.mxu0 %v1649_v49 }
  0xf9   : > { %604 = vadd.xlane.f32.xlu0 %v588_v52  ;;  %v1579_v57 = vpop.f32.mrb[10].mxu0  ;;  %v476_v15 = vadd.f32 %v1887_v26, %v475_v55  ;;  %1623 = vmatprep.subr.bf16.mxu1 %v1649_v49 }
  0xfa   : > { %v478_v60 = vpop.f32.mrb[11].mxu0  ;;  %v487_v11 = vadd.f32 %v1579_v57, %v1887_v26  ;;  %v532_v14 = vmul.f32 0.2, %v484_v8  ;;  %vm516_vm9 = vcmp.ge.f32.partialorder %v484_v8, 0.0 }
  0xfb   : > { %606 = vadd.xlane.f32.xlu1 %v589_v56  ;;  %v479_v18 = vadd.f32 %v1887_v26, %v478_v60  ;;  %v530_v19 = vmul.f32 0.2, %v476_v15  ;;  %vm514_vm11 = vcmp.ge.f32.partialorder %v476_v15, 0.0  ;;  %1599 = vmatpush3.bf16.msra.mxu0 %v1649_v49 }
  0xfc   : > { %v533_v17 = vmul.f32 0.2, %v487_v11  ;;  %vm517_vm10 = vcmp.ge.f32.partialorder %v487_v11, 0.0  ;;  %v1951_v20 = vsel %vm516_vm9, %v484_v8, %v532_v14  ;;  %1631 = vmatpush3.bf16.msra.mxu1 %v1649_v49 }
  0xfd   : > { %564 = vadd.xlane.f32.xlu0 %v1916_v59  ;;  %v531_v22 = vmul.f32 0.2, %v479_v18  ;;  %vm515_vm12 = vcmp.ge.f32.partialorder %v479_v18, 0.0  ;;  %v1960_v24 = vsel %vm514_vm11, %v476_v15, %v530_v19  ;;  %v598_v29 = vmul.f32 %v1951_v20, %v1951_v20 }
  0xfe   : > { %v1957_v23 = vsel %vm517_vm10, %v487_v11, %v533_v17  ;;  %v596_v34 = vmul.f32 %v1960_v24, %v1960_v24 }
  0xff   : > { %568 = vadd.xlane.f32.xlu1 %v1919_v62  ;;  %v1582_v1 = vpop.f32.mrb[12].mxu0  ;;  %v1967_v28 = vsel %vm515_vm12, %v479_v18, %v531_v22  ;;  %v599_v31 = vmul.f32 %v1957_v23, %v1957_v23 }
 0x100   : > { %v1925_v3 = vpop.f32.mrb[13].mxu0  ;;  %v500_v27 = vadd.f32 %v1582_v1, %v1887_v26  ;;  %v597_v37 = vmul.f32 %v1967_v28, %v1967_v28 }
 0x101   : > { %616 = vadd.xlane.f32.xlu0 %v594_v0  ;;  %v1583_v4 = vpop.f32.mrb[14].mxu0  ;;  %v492_v35 = vadd.f32 %v1887_v26, %v1925_v3 }
 0x102   : > { %v1929_v6 = vpop.f32.mrb[15].mxu0  ;;  %v536_v32 = vmul.f32 0.2, %v500_v27  ;;  %v503_v33 = vadd.f32 %v1583_v4, %v1887_v26  ;;  %vm520_vm13 = vcmp.ge.f32.partialorder %v500_v27, 0.0 }
 0x103   : > { %570 = vadd.xlane.f32.xlu1 %v1927_v5  ;;  %v495_v41 = vadd.f32 %v1887_v26, %v1929_v6  ;;  %v534_v44 = vmul.f32 0.2, %v492_v35  ;;  %vm518_vm15 = vcmp.ge.f32.partialorder %v492_v35, 0.0 }
 0x104   : > { %v537_v39 = vmul.f32 0.2, %v503_v33  ;;  %v1989_v43 = vsel %vm520_vm13, %v500_v27, %v536_v32  ;;  %vm521_vm14 = vcmp.ge.f32.partialorder %v503_v33, 0.0 }
 0x105   : > { %566 = vadd.xlane.f32.xlu0 %v1936_v9  ;;  %v535_v47 = vmul.f32 0.2, %v495_v41  ;;  %vm519_vm0 = vcmp.ge.f32.partialorder %v495_v41, 0.0  ;;  %v1998_v26 = vsel %vm518_vm15, %v492_v35, %v534_v44  ;;  %v602_v53 = vmul.f32 %v1989_v43, %v1989_v43 }
 0x106   : > { %v1995_v48 = vsel %vm521_vm14, %v503_v33, %v537_v39  ;;  %v600_v51 = vmul.f32 %v1998_v26, %v1998_v26 }
 0x107   : > { %618 = vadd.xlane.f32.xlu1 %v595_v10  ;;  %v2004_v50 = vsel %vm519_vm0, %v495_v41, %v535_v47  ;;  %v603_v54 = vmul.f32 %v1995_v48, %v1995_v48 }
 0x108   : > { %v601_v52 = vmul.f32 %v2004_v50, %v2004_v50 }
 0x109   : > { %612 = vadd.xlane.f32.xlu0 %v592_v12 }
 0x10b   : > { %614 = vadd.xlane.f32.xlu1 %v593_v16 }
 0x10d   : > { %576 = vadd.xlane.f32.xlu0 %v1951_v20 }
 0x10f   : > { %578 = vadd.xlane.f32.xlu1 %v1957_v23 }
 0x111   : > { %572 = vadd.xlane.f32.xlu0 %v1960_v24 }
 0x113   : > { %574 = vadd.xlane.f32.xlu1 %v1967_v28 }
 0x115   : > { %624 = vadd.xlane.f32.xlu0 %v598_v29 }
 0x117   : > { %626 = vadd.xlane.f32.xlu1 %v599_v31 }
 0x119   : > { %620 = vadd.xlane.f32.xlu0 %v596_v34 }
 0x11b   : > { %622 = vadd.xlane.f32.xlu1 %v597_v37 }
 0x11d   : > { %584 = vadd.xlane.f32.xlu0 %v1989_v43 }
 0x11f   : > { %586 = vadd.xlane.f32.xlu1 %v1995_v48 }
 0x121   : > { %580 = vadd.xlane.f32.xlu0 %v1998_v26 }
 0x123   : > { %582 = vadd.xlane.f32.xlu1 %v2004_v50 }
 0x125   : > { %628 = vadd.xlane.f32.xlu0 %v600_v51 }
 0x127   : > { %630 = vadd.xlane.f32.xlu1 %v601_v52 }
 0x129   : > { %632 = vadd.xlane.f32.xlu0 %v602_v53 }
 0x12b   : > { %634 = vadd.xlane.f32.xlu1 %v603_v54 }
 0x17a   : > { %v561_v55 = vpop.xlane.xlu0 %560 }
 0x17b   : > { %v2015_v58 = vmul.f32 0.015625, %v561_v55 }
 0x17c   : > { %v563_v56 = vpop.xlane.xlu1 %562 }
 0x17d   : > { %v639_v61 = vmul.f32 0.015625, %v563_v56  ;;  %v670_v0 = vmul.f32 %v2015_v58, %v2015_v58 }
 0x17e   : > { %v557_v57 = vpop.xlane.xlu0 %556 }
 0x17f   : > { %v2019_v1 = vmul.f32 0.015625, %v557_v57  ;;  %v671_v6 = vmul.f32 %v639_v61, %v639_v61  ;;  %v751_v56 = vsub.f32 %v1896_v40, %v639_v61 }
 0x180   : > { %v559_v60 = vpop.xlane.xlu1 %558 }
 0x181   : > { %v2021_v3 = vmul.f32 0.015625, %v559_v60  ;;  %v668_v11 = vmul.f32 %v2019_v1, %v2019_v1 }
 0x182   : > { %v609_v63 = vpop.xlane.xlu0 %608 }
 0x183   : > { %v654_v2 = vmul.f32 0.015625, %v609_v63  ;;  %v669_v15 = vmul.f32 %v2021_v3, %v2021_v3 }
 0x184   : > { %v611_v4 = vpop.xlane.xlu1 %610 }
 0x185   : > { %v686_v7 = vsub.f32 %v654_v2, %v670_v0  ;;  %v655_v8 = vmul.f32 0.015625, %v611_v4  ;;  %v750_v0 = vsub.f32 %v1893_v38, %v2015_v58  ;;  %v749_v38 = vsub.f32 %v1902_v45, %v2021_v3 }
 0x186   : > { %v605_v10 = vpop.xlane.xlu0 %604 }
 0x187   : > { %v702_v12 = vmax.f32 %v686_v7, 0.0  ;;  %v687_v13 = vsub.f32 %v655_v8, %v671_v6  ;;  %v652_v14 = vmul.f32 0.015625, %v605_v10  ;;  %v748_v7 = vsub.f32 %v1899_v42, %v2019_v1 }
 0x188   : > { %v607_v16 = vpop.xlane.xlu1 %606 }
 0x189   : > { %v718_v17 = vadd.f32 1e-05, %v702_v12  ;;  %v703_v18 = vmax.f32 %v687_v13, 0.0  ;;  %v684_v19 = vsub.f32 %v652_v14, %v668_v11  ;;  %v653_v21 = vmul.f32 0.015625, %v607_v16 }
 0x18a   : > { %v565_v22 = vpop.xlane.xlu0 %564 }
 0x18b   : > { %v719_v25 = vadd.f32 1e-05, %v703_v18  ;;  %v700_v27 = vmax.f32 %v684_v19, 0.0  ;;  %v685_v29 = vsub.f32 %v653_v21, %v669_v15  ;;  %1650 = vrsqrt.f32 %v718_v17  ;;  %v2053_v15 = vld [vmem:[%s2422_s3] ss:$0 sm:$0xff] }
 0x18c   : > { %v569_v30 = vpop.xlane.xlu1 %568  ;;  %v2033_v47 = vmul.f32 0.015625, %v565_v22 }
 0x18d   : > { %1652 = vrsqrt.f32 %v719_v25  ;;  %v716_v31 = vadd.f32 1e-05, %v700_v27  ;;  %v701_v32 = vmax.f32 %v685_v29, 0.0  ;;  %v2027_v33 = vmul.f32 0.015625, %v569_v30  ;;  %v2061_v30 = vld [vmem:[%s2423_s4] ss:$0 sm:$0xff] }
 0x18e   : > { %v617_v34 = vpop.xlane.xlu0 %616  ;;  %v672_v2 = vmul.f32 %v2033_v47, %v2033_v47 }
 0x18f   : > { %1654 = vrsqrt.f32 %v716_v31  ;;  %v717_v35 = vadd.f32 1e-05, %v701_v32  ;;  %v674_v36 = vmul.f32 %v2027_v33, %v2027_v33  ;;  %v658_v37 = vmul.f32 0.015625, %v617_v34 }
 0x190   : > { %v571_v39 = vpop.xlane.xlu1 %570 }
 0x191   : > { %1656 = vrsqrt.f32 %v717_v35  ;;  %v2031_v41 = vmul.f32 0.015625, %v571_v39  ;;  %v690_v44 = vsub.f32 %v658_v37, %v674_v36 }
 0x192   : > { %v567_v46 = vpop.xlane.xlu0 %566 }
 0x193   : > { %v706_v49 = vmax.f32 %v690_v44, 0.0  ;;  %v2035_v51 = vmul.f32 0.015625, %v567_v46  ;;  %v675_v53 = vmul.f32 %v2031_v41, %v2031_v41 }
 0x194   : > { %v619_v52 = vpop.xlane.xlu1 %618 }
 0x195   : > { %v659_v54 = vmul.f32 0.015625, %v619_v52  ;;  %v1651_v55 = vpop.eup %1650  ;;  %v722_v57 = vadd.f32 1e-05, %v706_v49  ;;  %v673_v10 = vmul.f32 %v2035_v51, %v2035_v51 }
 0x196   : > { %v613_v60 = vpop.xlane.xlu0 %612  ;;  %v766_v61 = vmul.f32 %v1651_v55, %v750_v0 }
 0x197   : > { %v1653_v63 = vpop.eup %1652  ;;  %v691_v4 = vsub.f32 %v659_v54, %v675_v53  ;;  %v656_v6 = vmul.f32 0.015625, %v613_v60  ;;  %1658 = vrsqrt.f32 %v722_v57 }
 0x198   : > { %v767_v8 = vmul.f32 %v1653_v63, %v751_v56  ;;  %v615_v11 = vpop.xlane.xlu1 %614  ;;  %v788_v27 = vmul.f32 %v2053_v15, %v766_v61 }
 0x199   : > { %v1655_v40 = vpop.eup %1654  ;;  %v707_v12 = vmax.f32 %v691_v4, 0.0  ;;  %v688_v13 = vsub.f32 %v656_v6, %v672_v2  ;;  %v657_v14 = vmul.f32 0.015625, %v615_v11  ;;  %v754_v6 = vsub.f32 %v1919_v62, %v2027_v33 }
 0x19a   : > { %v577_v58 = vpop.xlane.xlu0 %576  ;;  %v764_v42 = vmul.f32 %v1655_v40, %v748_v7  ;;  %v789_v19 = vmul.f32 %v2053_v15, %v767_v8  ;;  %v810_v46 = vadd.f32 %v2061_v30, %v788_v27  ;;  %v755_v7 = vsub.f32 %v1927_v5, %v2031_v41 }
 0x19b   : > { %v1657_v1 = vpop.eup %1656  ;;  %v723_v16 = vadd.f32 1e-05, %v707_v12  ;;  %v704_v17 = vmax.f32 %v688_v13, 0.0  ;;  %v689_v18 = vsub.f32 %v657_v14, %v673_v10  ;;  %v2064_v34 = vmul.f32 0.015625, %v577_v58 }
 0x19c   : > { %v579_v21 = vpop.xlane.xlu1 %578  ;;  %v765_v22 = vmul.f32 %v1657_v1, %v749_v38  ;;  %v786_v25 = vmul.f32 %v2053_v15, %v764_v42  ;;  %v811_v35 = vadd.f32 %v2061_v30, %v789_v19  ;;  %v752_v13 = vsub.f32 %v1916_v59, %v2033_v47 }
 0x19d   : > { %1660 = vrsqrt.f32 %v723_v16  ;;  %v720_v45 = vadd.f32 1e-05, %v704_v17  ;;  %v705_v3 = vmax.f32 %v689_v18, 0.0  ;;  %v2069_v44 = vmul.f32 0.015625, %v579_v21 }
 0x19e   : > { %v573_v29 = vpop.xlane.xlu0 %572  ;;  %v787_v31 = vmul.f32 %v2053_v15, %v765_v22  ;;  %v808_v37 = vadd.f32 %v2061_v30, %v786_v25  ;;  %v678_v53 = vmul.f32 %v2064_v34, %v2064_v34  ;;  %v825_v56 = vpack.c.bf16 %v811_v35, %v810_v46 }
 0x19f   : > { %1662 = vrsqrt.f32 %v720_v45  ;;  %v721_v32 = vadd.f32 1e-05, %v705_v3  ;;  %v2074_v54 = vmul.f32 0.015625, %v573_v29  ;;  %v679_v0 = vmul.f32 %v2069_v44, %v2069_v44 }
 0x1a0   : > { %v575_v36 = vpop.xlane.xlu1 %574  ;;  %v809_v39 = vadd.f32 %v2061_v30, %v787_v31  ;;  %v753_v16 = vsub.f32 %v1936_v9, %v2035_v51 }
 0x1a1   : > { %1664 = vrsqrt.f32 %v721_v32  ;;  %v1659_v57 = vpop.eup %1658  ;;  %v2076_v60 = vmul.f32 0.015625, %v575_v36  ;;  %v676_v11 = vmul.f32 %v2074_v54, %v2074_v54 }
 0x1a2   : > { %v625_v49 = vpop.xlane.xlu0 %624  ;;  %v824_v52 = vpack.c.bf16 %v809_v39, %v808_v37  ;;  %v770_v58 = vmul.f32 %v1659_v57, %v754_v6 }
 0x1a3   : > { %v662_v55 = vmul.f32 0.015625, %v625_v49  ;;  %v677_v14 = vmul.f32 %v2076_v60, %v2076_v60 }
 0x1a4   : > { %v627_v63 = vpop.xlane.xlu1 %626  ;;  %1600 = vmatprep.mubr.bf16.mxu0 %v824_v52  ;;  %v792_v31 = vmul.f32 %v2053_v15, %v770_v58 }
 0x1a5   : > { %v694_v2 = vsub.f32 %v662_v55, %v678_v53  ;;  %v663_v4 = vmul.f32 0.015625, %v627_v63  ;;  %1601 = vmatmul.mubr.bf16.vlgmr.msra.gmra.mrb[16].mxu0 %v825_v56 }
 0x1a6   : > { %v621_v8 = vpop.xlane.xlu0 %620  ;;  %v814_v52 = vadd.f32 %v2061_v30, %v792_v31 }
 0x1a7   : > { %v1661_v10 = vpop.eup %1660  ;;  %v710_v40 = vmax.f32 %v694_v2, 0.0  ;;  %v695_v61 = vsub.f32 %v663_v4, %v679_v0  ;;  %v660_v12 = vmul.f32 0.015625, %v621_v8 }
 0x1a8   : > { %v623_v38 = vpop.xlane.xlu1 %622  ;;  %v771_v62 = vmul.f32 %v1661_v10, %v755_v7 }
 0x1a9   : > { %v1663_v33 = vpop.eup %1662  ;;  %v726_v42 = vadd.f32 1e-05, %v710_v40  ;;  %v711_v5 = vmax.f32 %v695_v61, 0.0  ;;  %v692_v41 = vsub.f32 %v660_v12, %v676_v11  ;;  %v661_v1 = vmul.f32 0.015625, %v623_v38 }
 0x1aa   : > { %v585_v17 = vpop.xlane.xlu0 %584  ;;  %v768_v18 = vmul.f32 %v1663_v33, %v752_v13  ;;  %v793_v19 = vmul.f32 %v2053_v15, %v771_v62  ;;  %v758_v11 = vsub.f32 %v1951_v20, %v2064_v34  ;;  %v759_v40 = vsub.f32 %v1957_v23, %v2069_v44 }
 0x1ab   : > { %v1665_v21 = vpop.eup %1664  ;;  %1666 = vrsqrt.f32 %v726_v42  ;;  %v727_v59 = vadd.f32 1e-05, %v711_v5  ;;  %v708_v47 = vmax.f32 %v692_v41, 0.0  ;;  %v693_v22 = vsub.f32 %v661_v1, %v677_v14 }
 0x1ac   : > { %v587_v25 = vpop.xlane.xlu1 %586  ;;  %v769_v45 = vmul.f32 %v1665_v21, %v753_v16  ;;  %v790_v3 = vmul.f32 %v2053_v15, %v768_v18  ;;  %v815_v35 = vadd.f32 %v2061_v30, %v793_v19  ;;  %v2104_v56 = vmul.f32 0.015625, %v585_v17 }
 0x1ad   : > { %1668 = vrsqrt.f32 %v727_v59  ;;  %v724_v27 = vadd.f32 1e-05, %v708_v47  ;;  %v709_v29 = vmax.f32 %v693_v22, 0.0  ;;  %v2108_v2 = vmul.f32 0.015625, %v587_v25 }
 0x1ae   : > { %v581_v32 = vpop.xlane.xlu0 %580  ;;  %v791_v9 = vmul.f32 %v2053_v15, %v769_v45  ;;  %v812_v39 = vadd.f32 %v2061_v30, %v790_v3  ;;  %v827_v0 = vpack.c.bf16 %v815_v35, %v814_v52  ;;  %v682_v13 = vmul.f32 %v2104_v56, %v2104_v56 }
 0x1af   : > { %1670 = vrsqrt.f32 %v724_v27  ;;  %v725_v51 = vadd.f32 1e-05, %v709_v29  ;;  %v2097_v36 = vmul.f32 0.015625, %v581_v32  ;;  %v756_v62 = vsub.f32 %v1960_v24, %v2074_v54 }
 0x1b0   : > { %v583_v37 = vpop.xlane.xlu1 %582  ;;  %v813_v46 = vadd.f32 %v2061_v30, %v791_v9  ;;  %v683_v33 = vmul.f32 %v2108_v2, %v2108_v2  ;;  %v757_v16 = vsub.f32 %v1967_v28, %v2076_v60  ;;  %v762_v52 = vsub.f32 %v1989_v43, %v2104_v56 }
 0x1b1   : > { %1672 = vrsqrt.f32 %v725_v51  ;;  %v2101_v49 = vmul.f32 0.015625, %v583_v37  ;;  %v680_v57 = vmul.f32 %v2097_v36, %v2097_v36  ;;  %v760_v51 = vsub.f32 %v1998_v26, %v2097_v36 }
 0x1b2   : > { %v629_v53 = vpop.xlane.xlu0 %628  ;;  %v826_v55 = vpack.c.bf16 %v813_v46, %v812_v39 }
 0x1b3   : > { %v664_v63 = vmul.f32 0.015625, %v629_v53  ;;  %v681_v7 = vmul.f32 %v2101_v49, %v2101_v49  ;;  %v761_v37 = vsub.f32 %v2004_v50, %v2101_v49 }
 0x1b4   : > { %v631_v4 = vpop.xlane.xlu1 %630  ;;  %1604 = vmatprep.mubr.bf16.mxu1 %v826_v55 }
 0x1b5   : > { %v1667_v6 = vpop.eup %1666  ;;  %v696_v8 = vsub.f32 %v664_v63, %v680_v57  ;;  %v665_v10 = vmul.f32 0.015625, %v631_v4  ;;  %1605 = vmatmul.mubr.bf16.vlgmr.msra.gmra.mrb[0].mxu1 %v827_v0  ;;  %v763_v63 = vsub.f32 %v1995_v48, %v2108_v2  ;;  %v2151_v2 = vld [vmem:[%s2425_s6] ss:$0 sm:$0xff] }
 0x1b6   : > { %v633_v61 = vpop.xlane.xlu0 %632  ;;  %v774_v5 = vmul.f32 %v1667_v6, %v758_v11 }
 0x1b7   : > { %v1669_v12 = vpop.eup %1668  ;;  %v712_v14 = vmax.f32 %v696_v8, 0.0  ;;  %v697_v38 = vsub.f32 %v665_v10, %v681_v7  ;;  %v666_v58 = vmul.f32 0.015625, %v633_v61 }
 0x1b8   : > { %v635_v42 = vpop.xlane.xlu1 %634  ;;  %v775_v20 = vmul.f32 %v1669_v12, %v759_v40  ;;  %v796_v45 = vmul.f32 %v2053_v15, %v774_v5 }
 0x1b9   : > { %v1671_v34 = vpop.eup %1670  ;;  %v728_v41 = vadd.f32 1e-05, %v712_v14  ;;  %v713_v23 = vmax.f32 %v697_v38, 0.0  ;;  %v698_v44 = vsub.f32 %v666_v58, %v682_v13  ;;  %v667_v1 = vmul.f32 0.015625, %v635_v42 }
 0x1ba   : > { %v772_v17 = vmul.f32 %v1671_v34, %v756_v62  ;;  %v797_v18 = vmul.f32 %v2053_v15, %v775_v20  ;;  %v818_v31 = vadd.f32 %v2061_v30, %v796_v45 }
 0x1bb   : > { %v1673_v19 = vpop.eup %1672  ;;  %1674 = vrsqrt.f32 %v728_v41  ;;  %v729_v24 = vadd.f32 1e-05, %v713_v23  ;;  %v714_v54 = vmax.f32 %v698_v44, 0.0  ;;  %v699_v21 = vsub.f32 %v667_v1, %v683_v33 }
 0x1bc   : > { %v773_v59 = vmul.f32 %v1673_v19, %v757_v16  ;;  %v794_v47 = vmul.f32 %v2053_v15, %v772_v17  ;;  %v819_v60 = vadd.f32 %v2061_v30, %v797_v18 }
 0x1bd   : > { %1676 = vrsqrt.f32 %v729_v24  ;;  %v730_v22 = vadd.f32 1e-05, %v714_v54  ;;  %v715_v25 = vmax.f32 %v699_v21, 0.0 }
 0x1be   : > { %v795_v3 = vmul.f32 %v2053_v15, %v773_v59  ;;  %v816_v27 = vadd.f32 %v2061_v30, %v794_v47  ;;  %v829_v9 = vpack.c.bf16 %v819_v60, %v818_v31 }
 0x1bf   : > { %1678 = vrsqrt.f32 %v730_v22  ;;  %v731_v28 = vadd.f32 1e-05, %v715_v25 }
 0x1c0   : > { %v817_v29 = vadd.f32 %v2061_v30, %v795_v3 }
 0x1c1   : > { %1680 = vrsqrt.f32 %v731_v28 }
 0x1c2   : > { %v828_v32 = vpack.c.bf16 %v817_v29, %v816_v27 }
 0x1c4   : > { %1608 = vmatprep.mubr.bf16.mxu1 %v828_v32 }
 0x1c5   : > { %v1675_v35 = vpop.eup %1674  ;;  %1609 = vmatmul.mubr.bf16.gmra.mrb[4].mxu1 %v829_v9 }
 0x1c6   : > { %v776_v39 = vmul.f32 %v1675_v35, %v760_v51 }
 0x1c7   : > { %v1677_v46 = vpop.eup %1676 }
 0x1c8   : > { %v777_v53 = vmul.f32 %v1677_v46, %v761_v37  ;;  %v798_v55 = vmul.f32 %v2053_v15, %v776_v39 }
 0x1c9   : > { %v1679_v57 = vpop.eup %1678 }
 0x1ca   : > { %v799_v26 = vmul.f32 %v2053_v15, %v777_v53  ;;  %v778_v36 = vmul.f32 %v1679_v57, %v762_v52  ;;  %v820_v4 = vadd.f32 %v2061_v30, %v798_v55 }
 0x1cb   : > { %v1681_v0 = vpop.eup %1680 }
 0x1cc   : > { %v821_v50 = vadd.f32 %v2061_v30, %v799_v26  ;;  %v779_v49 = vmul.f32 %v1681_v0, %v763_v63  ;;  %v800_v6 = vmul.f32 %v2053_v15, %v778_v36 }
 0x1ce   : > { %v830_v7 = vpack.c.bf16 %v821_v50, %v820_v4  ;;  %v801_v43 = vmul.f32 %v2053_v15, %v779_v49  ;;  %v822_v56 = vadd.f32 %v2061_v30, %v800_v6 }
 0x1d0   : > { %1612 = vmatprep.mubr.bf16.mxu1 %v830_v7  ;;  %v823_v8 = vadd.f32 %v2061_v30, %v801_v43 }
 0x1d2   : > { %v831_v48 = vpack.c.bf16 %v823_v8, %v822_v56 }
 0x1d4   : > { %1613 = vmatmul.mubr.bf16.gmra.mrb[8].mxu1 %v831_v48 }
 0x278   : > { %v1602_v10 = vpop.f32.mrb[16].mxu0 }
 0x279   : > { %v946_v11 = vadd.f32 %v1602_v10, %v2151_v2  ;;  %v937_v40 = vpop.f32.mrb[17].mxu0 }
 0x27a   : > { %v938_v61 = vadd.f32 %v2151_v2, %v937_v40  ;;  %v1603_v12 = vpop.f32.mrb[18].mxu0 }
 0x27b   : > { %v1018_v15 = vmul.f32 0.2, %v946_v11  ;;  %v949_v13 = vadd.f32 %v1603_v12, %v2151_v2  ;;  %v940_v14 = vpop.f32.mrb[19].mxu0  ;;  %vm1002_vm1 = vcmp.ge.f32.partialorder %v946_v11, 0.0 }
 0x27c   : > { %v941_v30 = vadd.f32 %v2151_v2, %v940_v14  ;;  %v1016_v38 = vmul.f32 0.2, %v938_v61  ;;  %vm1000_vm3 = vcmp.ge.f32.partialorder %v938_v61, 0.0 }
 0x27d   : > { %v1019_v58 = vmul.f32 0.2, %v949_v13  ;;  %v2157_v62 = vsel %vm1002_vm1, %v946_v11, %v1018_v15  ;;  %vm1003_vm2 = vcmp.ge.f32.partialorder %v949_v13, 0.0  ;;  %vm1414_vm1 = vcmask 130048  }
 0x27e   : > { %1054 = vadd.xlane.f32.xlu0 %v2157_v62  ;;  %v1017_v33 = vmul.f32 0.2, %v941_v30  ;;  %vm1001_vm4 = vcmp.ge.f32.partialorder %v941_v30, 0.0  ;;  %v2163_v5 = vsel %vm1000_vm3, %v938_v61, %v1016_v38  ;;  %v1084_v34 = vmul.f32 %v2157_v62, %v2157_v62 }
 0x27f   : > { %v2160_v42 = vsel %vm1003_vm2, %v949_v13, %v1019_v58  ;;  %v1082_v44 = vmul.f32 %v2163_v5, %v2163_v5 }
 0x280   : > { %1056 = vadd.xlane.f32.xlu1 %v2160_v42  ;;  %v2166_v20 = vsel %vm1001_vm4, %v941_v30, %v1017_v33  ;;  %v1085_v41 = vmul.f32 %v2160_v42, %v2160_v42 }
 0x281   : > { %v1083_v19 = vmul.f32 %v2166_v20, %v2166_v20 }
 0x282   : > { %1050 = vadd.xlane.f32.xlu0 %v2163_v5 }
 0x284   : > { %1052 = vadd.xlane.f32.xlu1 %v2166_v20 }
 0x286   : > { %1102 = vadd.xlane.f32.xlu0 %v1084_v34 }
 0x288   : > { %1104 = vadd.xlane.f32.xlu1 %v1085_v41  ;;  %v1606_v23 = vpop.f32.mrb[0].mxu1 }
 0x289   : > { %v962_v1 = vadd.f32 %v1606_v23, %v2151_v2  ;;  %v953_v16 = vpop.f32.mrb[1].mxu1 }
 0x28a   : > { %v954_v17 = vadd.f32 %v2151_v2, %v953_v16  ;;  %1098 = vadd.xlane.f32.xlu0 %v1082_v44  ;;  %v1607_v18 = vpop.f32.mrb[2].mxu1 }
 0x28b   : > { %v1022_v24 = vmul.f32 0.2, %v962_v1  ;;  %v965_v54 = vadd.f32 %v1607_v18, %v2151_v2  ;;  %v956_v21 = vpop.f32.mrb[3].mxu1  ;;  %vm1006_vm5 = vcmp.ge.f32.partialorder %v962_v1, 0.0 }
 0x28c   : > { %v957_v59 = vadd.f32 %v2151_v2, %v956_v21  ;;  %1100 = vadd.xlane.f32.xlu1 %v1083_v19  ;;  %v1020_v47 = vmul.f32 0.2, %v954_v17  ;;  %vm1004_vm7 = vcmp.ge.f32.partialorder %v954_v17, 0.0 }
 0x28d   : > { %v1023_v22 = vmul.f32 0.2, %v965_v54  ;;  %v2181_v25 = vsel %vm1006_vm5, %v962_v1, %v1022_v24  ;;  %vm1007_vm6 = vcmp.ge.f32.partialorder %v965_v54, 0.0 }
 0x28e   : > { %1062 = vadd.xlane.f32.xlu0 %v2181_v25  ;;  %v1021_v45 = vmul.f32 0.2, %v957_v59  ;;  %vm1005_vm8 = vcmp.ge.f32.partialorder %v957_v59, 0.0  ;;  %v2187_v28 = vsel %vm1004_vm7, %v954_v17, %v1020_v47  ;;  %v1088_v27 = vmul.f32 %v2181_v25, %v2181_v25 }
 0x28f   : > { %v2184_v3 = vsel %vm1007_vm6, %v965_v54, %v1023_v22  ;;  %v1086_v32 = vmul.f32 %v2187_v28, %v2187_v28 }
 0x290   : > { %1064 = vadd.xlane.f32.xlu1 %v2184_v3  ;;  %v2190_v60 = vsel %vm1005_vm8, %v957_v59, %v1021_v45  ;;  %v1089_v29 = vmul.f32 %v2184_v3, %v2184_v3 }
 0x291   : > { %v1087_v39 = vmul.f32 %v2190_v60, %v2190_v60 }
 0x292   : > { %1058 = vadd.xlane.f32.xlu0 %v2187_v28 }
 0x294   : > { %1060 = vadd.xlane.f32.xlu1 %v2190_v60 }
 0x296   : > { %1110 = vadd.xlane.f32.xlu0 %v1088_v27 }
 0x298   : > { %1112 = vadd.xlane.f32.xlu1 %v1089_v29  ;;  %v1610_v31 = vpop.f32.mrb[4].mxu1 }
 0x299   : > { %v978_v9 = vadd.f32 %v1610_v31, %v2151_v2  ;;  %v969_v51 = vpop.f32.mrb[5].mxu1 }
 0x29a   : > { %v970_v35 = vadd.f32 %v2151_v2, %v969_v51  ;;  %1106 = vadd.xlane.f32.xlu0 %v1086_v32  ;;  %v1611_v37 = vpop.f32.mrb[6].mxu1 }
 0x29b   : > { %v1026_v46 = vmul.f32 0.2, %v978_v9  ;;  %v981_v52 = vadd.f32 %v1611_v37, %v2151_v2  ;;  %v972_v53 = vpop.f32.mrb[7].mxu1  ;;  %vm1010_vm9 = vcmp.ge.f32.partialorder %v978_v9, 0.0 }
 0x29c   : > { %v973_v55 = vadd.f32 %v2151_v2, %v972_v53  ;;  %1108 = vadd.xlane.f32.xlu1 %v1087_v39  ;;  %v1024_v57 = vmul.f32 0.2, %v970_v35  ;;  %vm1008_vm11 = vcmp.ge.f32.partialorder %v970_v35, 0.0 }
 0x29d   : > { %v1027_v63 = vmul.f32 0.2, %v981_v52  ;;  %v2205_v26 = vsel %vm1010_vm9, %v978_v9, %v1026_v46  ;;  %vm1011_vm10 = vcmp.ge.f32.partialorder %v981_v52, 0.0 }
 0x29e   : > { %1070 = vadd.xlane.f32.xlu0 %v2205_v26  ;;  %v1025_v36 = vmul.f32 0.2, %v973_v55  ;;  %vm1009_vm12 = vcmp.ge.f32.partialorder %v973_v55, 0.0  ;;  %v2211_v4 = vsel %vm1008_vm11, %v970_v35, %v1024_v57  ;;  %v1092_v49 = vmul.f32 %v2205_v26, %v2205_v26 }
 0x29f   : > { %v2208_v0 = vsel %vm1011_vm10, %v981_v52, %v1027_v63  ;;  %v1090_v8 = vmul.f32 %v2211_v4, %v2211_v4 }
 0x2a0   : > { %1072 = vadd.xlane.f32.xlu1 %v2208_v0  ;;  %v2214_v50 = vsel %vm1009_vm12, %v973_v55, %v1025_v36  ;;  %v1093_v6 = vmul.f32 %v2208_v0, %v2208_v0 }
 0x2a1   : > { %v1091_v12 = vmul.f32 %v2214_v50, %v2214_v50 }
 0x2a2   : > { %1066 = vadd.xlane.f32.xlu0 %v2211_v4 }
 0x2a4   : > { %1068 = vadd.xlane.f32.xlu1 %v2214_v50 }
 0x2a6   : > { %1118 = vadd.xlane.f32.xlu0 %v1092_v49 }
 0x2a7   : > { %v1614_v7 = vpop.f32.mrb[8].mxu1 }
 0x2a8   : > { %v994_v43 = vadd.f32 %v1614_v7, %v2151_v2  ;;  %1120 = vadd.xlane.f32.xlu1 %v1093_v6  ;;  %v985_v56 = vpop.f32.mrb[9].mxu1 }
 0x2a9   : > { %v986_v48 = vadd.f32 %v2151_v2, %v985_v56  ;;  %v1615_v10 = vpop.f32.mrb[10].mxu1 }
 0x2aa   : > { %v1030_v11 = vmul.f32 0.2, %v994_v43  ;;  %v997_v40 = vadd.f32 %v1615_v10, %v2151_v2  ;;  %1114 = vadd.xlane.f32.xlu0 %v1090_v8  ;;  %v988_v61 = vpop.f32.mrb[11].mxu1  ;;  %vm1014_vm13 = vcmp.ge.f32.partialorder %v994_v43, 0.0 }
 0x2ab   : > { %v989_v15 = vadd.f32 %v2151_v2, %v988_v61  ;;  %v1028_v30 = vmul.f32 0.2, %v986_v48  ;;  %vm1012_vm15 = vcmp.ge.f32.partialorder %v986_v48, 0.0 }
 0x2ac   : > { %v1031_v13 = vmul.f32 0.2, %v997_v40  ;;  %1116 = vadd.xlane.f32.xlu1 %v1091_v12  ;;  %v2229_v14 = vsel %vm1014_vm13, %v994_v43, %v1030_v11  ;;  %vm1015_vm14 = vcmp.ge.f32.partialorder %v997_v40, 0.0 }
 0x2ad   : > { %v1029_v58 = vmul.f32 0.2, %v989_v15  ;;  %vm1013_vm0 = vcmp.ge.f32.partialorder %v989_v15, 0.0  ;;  %v2235_v33 = vsel %vm1012_vm15, %v986_v48, %v1028_v30  ;;  %v1096_v23 = vmul.f32 %v2229_v14, %v2229_v14 }
 0x2ae   : > { %1078 = vadd.xlane.f32.xlu0 %v2229_v14  ;;  %v2232_v38 = vsel %vm1015_vm14, %v997_v40, %v1031_v13  ;;  %v1094_v34 = vmul.f32 %v2235_v33, %v2235_v33 }
 0x2af   : > { %v2238_v2 = vsel %vm1013_vm0, %v989_v15, %v1029_v58  ;;  %v1097_v44 = vmul.f32 %v2232_v38, %v2232_v38 }
 0x2b0   : > { %1080 = vadd.xlane.f32.xlu1 %v2232_v38  ;;  %v1095_v41 = vmul.f32 %v2238_v2, %v2238_v2 }
 0x2b2   : > { %1074 = vadd.xlane.f32.xlu0 %v2235_v33 }
 0x2b4   : > { %1076 = vadd.xlane.f32.xlu1 %v2238_v2 }
 0x2b6   : > { %1122 = vadd.xlane.f32.xlu0 %v1094_v34 }
 0x2b8   : > { %1124 = vadd.xlane.f32.xlu1 %v1095_v41 }
 0x2ba   : > { %1126 = vadd.xlane.f32.xlu0 %v1096_v23  ;;  %v2271_v23 = vld [vmem:[%s2426_s7] ss:$0 sm:$0xff] }
 0x2bc   : > { %1128 = vadd.xlane.f32.xlu1 %v1097_v44 }
 0x30b   : > { %v1055_v1 = vpop.xlane.xlu0 %1054 }
 0x30c   : > { %v1132_v18 = vmul.f32 0.0625, %v1055_v1 }
 0x30d   : > { %v1057_v16 = vpop.xlane.xlu1 %1056 }
 0x30e   : > { %v1133_v24 = vmul.f32 0.0625, %v1057_v16  ;;  %v1164_v21 = vmul.f32 %v1132_v18, %v1132_v18  ;;  %v1244_v30 = vsub.f32 %v2157_v62, %v1132_v18  ;;  %v2279_v62 = vld [vmem:[%s2427_s8] ss:$0 sm:$0xff] }
 0x30f   : > { %v1051_v17 = vpop.xlane.xlu0 %1050 }
 0x310   : > { %v2249_v59 = vmul.f32 0.0625, %v1051_v17  ;;  %v1165_v27 = vmul.f32 %v1133_v24, %v1133_v24  ;;  %v1245_v17 = vsub.f32 %v2160_v42, %v1133_v24 }
 0x311   : > { %v1053_v19 = vpop.xlane.xlu1 %1052 }
 0x312   : > { %v2251_v22 = vmul.f32 0.0625, %v1053_v19  ;;  %v1162_v9 = vmul.f32 %v2249_v59, %v2249_v59 }
 0x313   : > { %v1103_v54 = vpop.xlane.xlu0 %1102 }
 0x314   : > { %v1148_v47 = vmul.f32 0.0625, %v1103_v54  ;;  %v1163_v39 = vmul.f32 %v2251_v22, %v2251_v22 }
 0x315   : > { %v1105_v45 = vpop.xlane.xlu1 %1104 }
 0x316   : > { %v1180_v29 = vsub.f32 %v1148_v47, %v1164_v21  ;;  %v1149_v31 = vmul.f32 0.0625, %v1105_v45 }
 0x317   : > { %v1099_v32 = vpop.xlane.xlu0 %1098 }
 0x318   : > { %v1196_v51 = vmax.f32 %v1180_v29, 0.0  ;;  %v1181_v35 = vsub.f32 %v1149_v31, %v1165_v27  ;;  %v1146_v37 = vmul.f32 0.0625, %v1099_v32  ;;  %v1242_v29 = vsub.f32 %v2163_v5, %v2249_v59 }
 0x319   : > { %v1101_v46 = vpop.xlane.xlu1 %1100 }
 0x31a   : > { %v1212_v52 = vadd.f32 1e-05, %v1196_v51  ;;  %v1197_v53 = vmax.f32 %v1181_v35, 0.0  ;;  %v1178_v55 = vsub.f32 %v1146_v37, %v1162_v9  ;;  %v1147_v57 = vmul.f32 0.0625, %v1101_v46 }
 0x31b   : > { %v1063_v63 = vpop.xlane.xlu0 %1062  ;;  %v1243_v46 = vsub.f32 %v2166_v20, %v2251_v22 }
 0x31c   : > { %1682 = vrsqrt.f32 %v1212_v52  ;;  %v1213_v36 = vadd.f32 1e-05, %v1197_v53  ;;  %v1194_v49 = vmax.f32 %v1178_v55, 0.0  ;;  %v1179_v6 = vsub.f32 %v1147_v57, %v1163_v39 }
 0x31d   : > { %v1065_v7 = vpop.xlane.xlu1 %1064  ;;  %v2257_v10 = vmul.f32 0.0625, %v1063_v63 }
 0x31e   : > { %1684 = vrsqrt.f32 %v1213_v36  ;;  %v1210_v43 = vadd.f32 1e-05, %v1194_v49  ;;  %v1195_v56 = vmax.f32 %v1179_v6, 0.0  ;;  %v2259_v40 = vmul.f32 0.0625, %v1065_v7 }
 0x31f   : > { %v1059_v8 = vpop.xlane.xlu0 %1058  ;;  %v1168_v12 = vmul.f32 %v2257_v10, %v2257_v10 }
 0x320   : > { %1686 = vrsqrt.f32 %v1210_v43  ;;  %v1211_v48 = vadd.f32 1e-05, %v1195_v56  ;;  %v2263_v15 = vmul.f32 0.0625, %v1059_v8  ;;  %v1169_v44 = vmul.f32 %v2259_v40, %v2259_v40 }
 0x321   : > { %v1061_v11 = vpop.xlane.xlu1 %1060 }
 0x322   : > { %1688 = vrsqrt.f32 %v1211_v48  ;;  %v2266_v58 = vmul.f32 0.0625, %v1061_v11  ;;  %v1166_v18 = vmul.f32 %v2263_v15, %v2263_v15 }
 0x323   : > { %v1111_v61 = vpop.xlane.xlu0 %1110 }
 0x324   : > { %v1152_v13 = vmul.f32 0.0625, %v1111_v61  ;;  %v1167_v24 = vmul.f32 %v2266_v58, %v2266_v58 }
 0x325   : > { %v1113_v34 = vpop.xlane.xlu1 %1112 }
 0x326   : > { %v1683_v41 = vpop.eup %1682  ;;  %v1184_v1 = vsub.f32 %v1152_v13, %v1168_v12  ;;  %v1153_v16 = vmul.f32 0.0625, %v1113_v34 }
 0x327   : > { %v1260_v19 = vmul.f32 %v1683_v41, %v1244_v30  ;;  %v1107_v54 = vpop.xlane.xlu0 %1106 }
 0x328   : > { %v1685_v21 = vpop.eup %1684  ;;  %v1200_v47 = vmax.f32 %v1184_v1, 0.0  ;;  %v1185_v45 = vsub.f32 %v1153_v16, %v1169_v44  ;;  %v1150_v27 = vmul.f32 0.0625, %v1107_v54 }
 0x329   : > { %v1282_v31 = vmul.f32 %v2271_v23, %v1260_v19  ;;  %v1261_v42 = vmul.f32 %v1685_v21, %v1245_v17  ;;  %v1109_v32 = vpop.xlane.xlu1 %1108  ;;  %v1248_v19 = vsub.f32 %v2181_v25, %v2257_v10 }
 0x32a   : > { %v1687_v9 = vpop.eup %1686  ;;  %v1216_v51 = vadd.f32 1e-05, %v1200_v47  ;;  %v1201_v35 = vmax.f32 %v1185_v45, 0.0  ;;  %v1182_v37 = vsub.f32 %v1150_v27, %v1166_v18  ;;  %v1151_v39 = vmul.f32 0.0625, %v1109_v32 }
 0x32b   : > { %v1304_v52 = vadd.f32 %v2279_v62, %v1282_v31  ;;  %v1283_v53 = vmul.f32 %v2271_v23, %v1261_v42  ;;  %v1258_v5 = vmul.f32 %v1687_v9, %v1242_v29  ;;  %v1071_v59 = vpop.xlane.xlu0 %1070  ;;  %v1249_v29 = vsub.f32 %v2184_v3, %v2259_v40 }
 0x32c   : > { %v1689_v55 = vpop.eup %1688  ;;  %1690 = vrsqrt.f32 %v1216_v51  ;;  %v1217_v57 = vadd.f32 1e-05, %v1201_v35  ;;  %v1198_v63 = vmax.f32 %v1182_v37, 0.0  ;;  %v1183_v36 = vsub.f32 %v1151_v39, %v1167_v24 }
 0x32d   : > { %v1522_v49 = vmul.f32 -1.442695, %v1304_v52  ;;  %v1305_v6 = vadd.f32 %v2279_v62, %v1283_v53  ;;  %v1280_v7 = vmul.f32 %v2271_v23, %v1258_v5  ;;  %v1259_v43 = vmul.f32 %v1689_v55, %v1243_v46  ;;  %v1073_v56 = vpop.xlane.xlu1 %1072 }
 0x32e   : > { %1692 = vrsqrt.f32 %v1217_v57  ;;  %v1214_v20 = vadd.f32 1e-05, %v1198_v63  ;;  %v1199_v22 = vmax.f32 %v1183_v36, 0.0  ;;  %v2297_v41 = vmul.f32 0.0625, %v1071_v59 }
 0x32f   : > { %1694 = vpow2.f32 %v1522_v49  ;;  %v1523_v8 = vmul.f32 -1.442695, %v1305_v6  ;;  %v1302_v48 = vadd.f32 %v2279_v62, %v1280_v7  ;;  %v1281_v11 = vmul.f32 %v2271_v23, %v1259_v43  ;;  %v1067_v61 = vpop.xlane.xlu0 %1066 }
 0x330   : > { %1696 = vrsqrt.f32 %v1214_v20  ;;  %v1215_v12 = vadd.f32 1e-05, %v1199_v22  ;;  %v2299_v44 = vmul.f32 0.0625, %v1073_v56  ;;  %v2301_v17 = vmul.f32 0.0625, %v1067_v61 }
 0x331   : > { %1698 = vpow2.f32 %v1523_v8  ;;  %v1520_v13 = vmul.f32 -1.442695, %v1302_v48  ;;  %v1303_v30 = vadd.f32 %v2279_v62, %v1281_v11  ;;  %v1069_v34 = vpop.xlane.xlu1 %1068  ;;  %v1172_v47 = vmul.f32 %v2297_v41, %v2297_v41 }
 0x332   : > { %1700 = vrsqrt.f32 %v1215_v12  ;;  %v1173_v45 = vmul.f32 %v2299_v44, %v2299_v44  ;;  %v2311_v42 = vmul.f32 0.0625, %v1069_v34  ;;  %v1170_v25 = vmul.f32 %v2301_v17, %v2301_v17 }
 0x333   : > { %1702 = vpow2.f32 %v1520_v13  ;;  %v1521_v1 = vmul.f32 -1.442695, %v1303_v30  ;;  %v1119_v16 = vpop.xlane.xlu0 %1118  ;;  %v1246_v37 = vsub.f32 %v2187_v28, %v2263_v15  ;;  %v1247_v53 = vsub.f32 %v2190_v60, %v2266_v58 }
 0x334   : > { %v1156_v54 = vmul.f32 0.0625, %v1119_v16  ;;  %v1171_v28 = vmul.f32 %v2311_v42, %v2311_v42 }
 0x335   : > { %1704 = vpow2.f32 %v1521_v1  ;;  %v1121_v21 = vpop.xlane.xlu1 %1120 }
 0x336   : > { %v1691_v18 = vpop.eup %1690  ;;  %v1157_v27 = vmul.f32 0.0625, %v1121_v21  ;;  %v1188_v10 = vsub.f32 %v1156_v54, %v1172_v47 }
 0x337   : > { %v1264_v31 = vmul.f32 %v1691_v18, %v1248_v19  ;;  %v1115_v24 = vpop.xlane.xlu0 %1114 }
 0x338   : > { %v1693_v32 = vpop.eup %1692  ;;  %v1189_v9 = vsub.f32 %v1157_v27, %v1173_v45  ;;  %v1154_v51 = vmul.f32 0.0625, %v1115_v24  ;;  %v1204_v7 = vmax.f32 %v1188_v10, 0.0 }
 0x339   : > { %v1695_v35 = vpop.eup %1694  ;;  %v1286_v39 = vmul.f32 %v2271_v23, %v1264_v31  ;;  %v1265_v46 = vmul.f32 %v1693_v32, %v1249_v29  ;;  %v1117_v52 = vpop.xlane.xlu1 %1116 }
 0x33a   : > { %v1697_v3 = vpop.eup %1696  ;;  %v1368_v40 = vadd.f32 1.0, %v1695_v35  ;;  %v1186_v5 = vsub.f32 %v1154_v51, %v1170_v25  ;;  %v1155_v59 = vmul.f32 0.0625, %v1117_v52  ;;  %v1205_v43 = vmax.f32 %v1189_v9, 0.0 }
 0x33b   : > { %v1699_v55 = vpop.eup %1698  ;;  %v1308_v57 = vadd.f32 %v2279_v62, %v1286_v39  ;;  %v1287_v63 = vmul.f32 %v2271_v23, %v1265_v46  ;;  %v1262_v36 = vmul.f32 %v1697_v3, %v1246_v37  ;;  %v1079_v15 = vpop.xlane.xlu0 %1078  ;;  %v1220_v19 = vadd.f32 1e-05, %v1204_v7 }
 0x33c   : > { %v1701_v49 = vpop.eup %1700  ;;  %1706 = vrcp.f32 %v1368_v40  ;;  %v1369_v6 = vadd.f32 1.0, %v1699_v55  ;;  %v1202_v11 = vmax.f32 %v1186_v5, 0.0  ;;  %v1187_v61 = vsub.f32 %v1155_v59, %v1171_v28 }
 0x33d   : > { %v1703_v56 = vpop.eup %1702  ;;  %v1526_v20 = vmul.f32 -1.442695, %v1308_v57  ;;  %v1309_v60 = vadd.f32 %v2279_v62, %v1287_v63  ;;  %v1284_v58 = vmul.f32 %v2271_v23, %v1262_v36  ;;  %v1263_v22 = vmul.f32 %v1701_v49, %v1247_v53  ;;  %v1081_v8 = vpop.xlane.xlu1 %1080 }
 0x33e   : > { %1708 = vrcp.f32 %v1369_v6  ;;  %v1366_v48 = vadd.f32 1.0, %v1703_v56  ;;  %v1203_v54 = vmax.f32 %v1187_v61, 0.0  ;;  %v1221_v45 = vadd.f32 1e-05, %v1205_v43 }
 0x33f   : > { %v1705_v12 = vpop.eup %1704  ;;  %1710 = vpow2.f32 %v1526_v20  ;;  %v1527_v13 = vmul.f32 -1.442695, %v1309_v60  ;;  %v1306_v30 = vadd.f32 %v2279_v62, %v1284_v58  ;;  %v1285_v34 = vmul.f32 %v2271_v23, %v1263_v22  ;;  %v1075_v1 = vpop.xlane.xlu0 %1074 }
 0x340   : > { %1712 = vrcp.f32 %v1366_v48  ;;  %v1367_v16 = vadd.f32 1.0, %v1705_v12  ;;  %v1218_v27 = vadd.f32 1e-05, %v1202_v11  ;;  %v1219_v31 = vadd.f32 1e-05, %v1203_v54 }
 0x341   : > { %1714 = vpow2.f32 %v1527_v13  ;;  %v1524_v21 = vmul.f32 -1.442695, %v1306_v30  ;;  %v1307_v18 = vadd.f32 %v2279_v62, %v1285_v34  ;;  %v1077_v47 = vpop.xlane.xlu1 %1076  ;;  %v2329_v24 = vmul.f32 0.0625, %v1079_v15 }
 0x342   : > { %1716 = vrcp.f32 %v1367_v16  ;;  %v2338_v25 = vmul.f32 0.0625, %v1075_v1  ;;  %v2340_v10 = vmul.f32 0.0625, %v1077_v47  ;;  %v2346_v39 = vmul.f32 0.0625, %v1081_v8 }
 0x343   : > { %1718 = vpow2.f32 %v1524_v21  ;;  %v1525_v29 = vmul.f32 -1.442695, %v1307_v18  ;;  %v1123_v32 = vpop.xlane.xlu0 %1122  ;;  %v1176_v53 = vmul.f32 %v2329_v24, %v2329_v24  ;;  %v1252_v48 = vsub.f32 %v2205_v26, %v2297_v41 }
 0x344   : > { %1720 = vrsqrt.f32 %v1220_v19  ;;  %v1158_v9 = vmul.f32 0.0625, %v1123_v32  ;;  %v1174_v37 = vmul.f32 %v2338_v25, %v2338_v25  ;;  %v1175_v46 = vmul.f32 %v2340_v10, %v2340_v10 }
 0x345   : > { %1722 = vpow2.f32 %v1525_v29  ;;  %v1125_v51 = vpop.xlane.xlu1 %1124  ;;  %v1177_v43 = vmul.f32 %v2346_v39, %v2346_v39  ;;  %v1253_v30 = vsub.f32 %v2208_v0, %v2299_v44  ;;  %v1250_v18 = vsub.f32 %v2211_v4, %v2301_v17 }
 0x346   : > { %v1707_v35 = vpop.eup %1706  ;;  %1724 = vrsqrt.f32 %v1221_v45  ;;  %v1159_v52 = vmul.f32 0.0625, %v1125_v51  ;;  %v1190_v5 = vsub.f32 %v1158_v9, %v1174_v37  ;;  %v1251_v26 = vsub.f32 %v2214_v50, %v2311_v42 }
 0x347   : > { %1417 = vst.msk [vmem:[%s2336_s12 + $0x10] sm:$0xff] %vm1414_vm1, %v1707_v35  ;;  %1726 = vrsqrt.f32 %v1218_v27  ;;  %v1127_v3 = vpop.xlane.xlu0 %1126 }
 0x348   : > { %v1709_v40 = vpop.eup %1708  ;;  %1728 = vrsqrt.f32 %v1219_v31  ;;  %v1160_v59 = vmul.f32 0.0625, %v1127_v3  ;;  %v1191_v57 = vsub.f32 %v1159_v52, %v1175_v46  ;;  %v1206_v15 = vmax.f32 %v1190_v5, 0.0 }
 0x349   : > { %v1711_v55 = vpop.eup %1710  ;;  %1418 = vst.msk [vmem:[%s2336_s12 + $0x18] sm:$0xff] %vm1414_vm1, %v1709_v40  ;;  %v1129_v63 = vpop.xlane.xlu1 %1128  ;;  %v1254_v3 = vsub.f32 %v2235_v33, %v2338_v25  ;;  %v1256_v33 = vsub.f32 %v2229_v14, %v2329_v24 }
 0x34a   : > { %v1713_v36 = vpop.eup %1712  ;;  %v1372_v28 = vadd.f32 1.0, %v1711_v55  ;;  %v1192_v49 = vsub.f32 %v1160_v59, %v1176_v53  ;;  %v1161_v6 = vmul.f32 0.0625, %v1129_v63  ;;  %v1207_v56 = vmax.f32 %v1191_v57, 0.0 }
 0x34b   : > { %v1715_v7 = vpop.eup %1714  ;;  %1415 = vst.msk [vmem:[%s2336_s12] sm:$0xff] %vm1414_vm1, %v1713_v36  ;;  %v1222_v58 = vadd.f32 1e-05, %v1206_v15  ;;  %v1255_v59 = vsub.f32 %v2238_v2, %v2340_v10  ;;  %v1257_v15 = vsub.f32 %v2232_v38, %v2346_v39 }
 0x34c   : > { %v1717_v20 = vpop.eup %1716  ;;  %1730 = vrcp.f32 %v1372_v28  ;;  %v1373_v60 = vadd.f32 1.0, %v1715_v7  ;;  %v1208_v22 = vmax.f32 %v1192_v49, 0.0  ;;  %v1223_v11 = vadd.f32 1e-05, %v1207_v56 }
 0x34d   : > { %v1719_v8 = vpop.eup %1718  ;;  %1416 = vst.msk [vmem:[%s2336_s12 + $0x8] sm:$0xff] %vm1414_vm1, %v1717_v20  ;;  %v1193_v61 = vsub.f32 %v1161_v6, %v1177_v43 }
 0x34e   : > { %v1721_v12 = vpop.eup %1720  ;;  %1732 = vrcp.f32 %v1373_v60  ;;  %v1370_v13 = vadd.f32 1.0, %v1719_v8  ;;  %v1224_v16 = vadd.f32 1e-05, %v1208_v22 }
 0x34f   : > { %v1723_v34 = vpop.eup %1722  ;;  %v1268_v1 = vmul.f32 %v1721_v12, %v1252_v48  ;;  %1734 = vrsqrt.f32 %v1222_v58  ;;  %v1209_v19 = vmax.f32 %v1193_v61, 0.0 }
 0x350   : > { %v1725_v54 = vpop.eup %1724  ;;  %1736 = vrcp.f32 %v1370_v13  ;;  %v1371_v21 = vadd.f32 1.0, %v1723_v34 }
 0x351   : > { %v1727_v41 = vpop.eup %1726  ;;  %v1290_v47 = vmul.f32 %v2271_v23, %v1268_v1  ;;  %v1269_v45 = vmul.f32 %v1725_v54, %v1253_v30  ;;  %1738 = vrsqrt.f32 %v1223_v11  ;;  %v1225_v0 = vadd.f32 1e-05, %v1209_v19 }
 0x352   : > { %v1729_v44 = vpop.eup %1728  ;;  %1740 = vrcp.f32 %v1371_v21  ;;  %v1266_v27 = vmul.f32 %v1727_v41, %v1250_v18 }
 0x353   : > { %v1312_v29 = vadd.f32 %v2279_v62, %v1290_v47  ;;  %v1291_v31 = vmul.f32 %v2271_v23, %v1269_v45  ;;  %v1267_v32 = vmul.f32 %v1729_v44, %v1251_v26  ;;  %1742 = vrsqrt.f32 %v1224_v16 }
 0x354   : > { %v1288_v4 = vmul.f32 %v2271_v23, %v1266_v27  ;;  %1744 = vrsqrt.f32 %v1225_v0 }
 0x355   : > { %v1530_v50 = vmul.f32 -1.442695, %v1312_v29  ;;  %v1313_v17 = vadd.f32 %v2279_v62, %v1291_v31  ;;  %v1289_v42 = vmul.f32 %v2271_v23, %v1267_v32 }
 0x356   : > { %v1731_v9 = vpop.eup %1730  ;;  %v1310_v51 = vadd.f32 %v2279_v62, %v1288_v4 }
 0x357   : > { %1421 = vst.msk [vmem:[%s2336_s12 + $0x30] sm:$0xff] %vm1414_vm1, %v1731_v9  ;;  %1746 = vpow2.f32 %v1530_v50  ;;  %v1531_v35 = vmul.f32 -1.442695, %v1313_v17  ;;  %v1311_v37 = vadd.f32 %v2279_v62, %v1289_v42 }
 0x358   : > { %v1733_v46 = vpop.eup %1732  ;;  %v1528_v52 = vmul.f32 -1.442695, %v1310_v51 }
 0x359   : > { %v1735_v40 = vpop.eup %1734  ;;  %1422 = vst.msk [vmem:[%s2336_s12 + $0x38] sm:$0xff] %vm1414_vm1, %v1733_v46  ;;  %1748 = vpow2.f32 %v1531_v35  ;;  %v1529_v53 = vmul.f32 -1.442695, %v1311_v37 }
 0x35a   : > { %v1737_v5 = vpop.eup %1736  ;;  %1750 = vpow2.f32 %v1528_v52  ;;  %v1270_v55 = vmul.f32 %v1735_v40, %v1254_v3 }
 0x35b   : > { %v1739_v57 = vpop.eup %1738  ;;  %1419 = vst.msk [vmem:[%s2336_s12 + $0x20] sm:$0xff] %vm1414_vm1, %v1737_v5  ;;  %1752 = vpow2.f32 %v1529_v53 }
 0x35c   : > { %v1741_v63 = vpop.eup %1740  ;;  %v1292_v25 = vmul.f32 %v2271_v23, %v1270_v55  ;;  %v1271_v36 = vmul.f32 %v1739_v57, %v1255_v59 }
 0x35d   : > { %v1743_v28 = vpop.eup %1742  ;;  %1420 = vst.msk [vmem:[%s2336_s12 + $0x28] sm:$0xff] %vm1414_vm1, %v1741_v63 }
 0x35e   : > { %v1745_v49 = vpop.eup %1744  ;;  %v1314_v2 = vadd.f32 %v2279_v62, %v1292_v25  ;;  %v1293_v10 = vmul.f32 %v2271_v23, %v1271_v36  ;;  %v1272_v6 = vmul.f32 %v1743_v28, %v1256_v33 }
 0x35f   : > { %v1273_v7 = vmul.f32 %v1745_v49, %v1257_v15 }
 0x360   : > { %v1532_v43 = vmul.f32 -1.442695, %v1314_v2  ;;  %v1315_v56 = vadd.f32 %v2279_v62, %v1293_v10  ;;  %v1294_v14 = vmul.f32 %v2271_v23, %v1272_v6 }
 0x361   : > { %v1747_v24 = vpop.eup %1746  ;;  %v1295_v20 = vmul.f32 %v2271_v23, %v1273_v7 }
 0x362   : > { %v1376_v60 = vadd.f32 1.0, %v1747_v24  ;;  %1754 = vpow2.f32 %v1532_v43  ;;  %v1533_v58 = vmul.f32 -1.442695, %v1315_v56  ;;  %v1316_v38 = vadd.f32 %v2279_v62, %v1294_v14 }
 0x363   : > { %v1749_v39 = vpop.eup %1748  ;;  %v1317_v22 = vadd.f32 %v2279_v62, %v1295_v20 }
 0x364   : > { %v1751_v8 = vpop.eup %1750  ;;  %1756 = vrcp.f32 %v1376_v60  ;;  %v1377_v48 = vadd.f32 1.0, %v1749_v39  ;;  %v1534_v12 = vmul.f32 -1.442695, %v1316_v38 }
 0x365   : > { %v1753_v11 = vpop.eup %1752  ;;  %v1374_v61 = vadd.f32 1.0, %v1751_v8  ;;  %1758 = vpow2.f32 %v1533_v58  ;;  %v1535_v23 = vmul.f32 -1.442695, %v1317_v22 }
 0x366   : > { %1760 = vrcp.f32 %v1377_v48  ;;  %v1375_v13 = vadd.f32 1.0, %v1753_v11 }
 0x367   : > { %1762 = vrcp.f32 %v1374_v61 }
 0x368   : > { %1764 = vrcp.f32 %v1375_v13 }
 0x369   : > { %1766 = vpow2.f32 %v1534_v12 }
 0x36a   : > { %1768 = vpow2.f32 %v1535_v23 }
 0x36c   : > { %v1755_v30 = vpop.eup %1754 }
 0x36d   : > { %v1378_v62 = vadd.f32 1.0, %v1755_v30 }
 0x36e   : > { %v1757_v34 = vpop.eup %1756 }
 0x36f   : > { %v1759_v1 = vpop.eup %1758  ;;  %1425 = vst.msk [vmem:[%s2336_s12 + $0x50] sm:$0xff] %vm1414_vm1, %v1757_v34  ;;  %1770 = vrcp.f32 %v1378_v62 }
 0x370   : > { %v1761_v16 = vpop.eup %1760  ;;  %v1379_v19 = vadd.f32 1.0, %v1759_v1 }
 0x371   : > { %v1763_v54 = vpop.eup %1762  ;;  %1426 = vst.msk [vmem:[%s2336_s12 + $0x58] sm:$0xff] %vm1414_vm1, %v1761_v16 }
 0x372   : > { %v1765_v21 = vpop.eup %1764  ;;  %1423 = vst.msk [vmem:[%s2336_s12 + $0x40] sm:$0xff] %vm1414_vm1, %v1763_v54  ;;  %1772 = vrcp.f32 %v1379_v19 }
 0x373   : > { %v1767_v18 = vpop.eup %1766  ;;  %1424 = vst.msk [vmem:[%s2336_s12 + $0x48] sm:$0xff] %vm1414_vm1, %v1765_v21 }
 0x374   : > { %v1769_v26 = vpop.eup %1768  ;;  %v1380_v41 = vadd.f32 1.0, %v1767_v18 }
 0x375   : > { %v1381_v47 = vadd.f32 1.0, %v1769_v26 }
 0x376   : > { %1774 = vrcp.f32 %v1380_v41 }
 0x377   : > { %1776 = vrcp.f32 %v1381_v47 }
 0x379   : > { %v1771_v45 = vpop.eup %1770 }
 0x37a   : > { %1427 = vst.msk [vmem:[%s2336_s12 + $0x60] sm:$0xff] %vm1414_vm1, %v1771_v45 }
 0x37c   : > { %v1773_v0 = vpop.eup %1772 }
 0x37d   : > { %1428 = vst.msk [vmem:[%s2336_s12 + $0x68] sm:$0xff] %vm1414_vm1, %v1773_v0 }
 0x380   : > { %v1775_v44 = vpop.eup %1774 }
 0x381   : > { %v1777_v27 = vpop.eup %1776  ;;  %1429 = vst.msk [vmem:[%s2336_s12 + $0x70] sm:$0xff] %vm1414_vm1, %v1775_v44 }
 0x382   : > { %1430 = vst.msk [vmem:[%s2336_s12 + $0x78] sm:$0xff] %vm1414_vm1, %v1777_v27 }
 0x383 PF: > { %s19_s30 = sadd.s32 1, %s1784_s30  }
 0x384   : > { %p16_p4 = scmp.ge.s32.totalorder %s19_s30, 4  }
 0x386   :  { %18 = sbr.rel (!%p16_p4) target bundleno = 1 (0x1), region = 86 }

</bundles_post_ra>
